<compile_context>
chip_gen: v5e
topology: v5e:2x2
jax: 0.10.0
libtpu: 0.0.40
codegen_flags: <defaults>
</compile_context>

<pallas_src>
import jax
import jax.numpy as jnp
from jax.experimental import pallas as pl
from jax.experimental.pallas import tpu as pltpu


# ---------------------------------------------------------------------------
# Kernel
# ---------------------------------------------------------------------------
def _ssh_conv_kernel(x_ref, w_ref, scale_ref, bias_ref, slope_ref, out_ref):
    """Fused 3x3 same-padding conv(s) + folded BN + per-channel leaky/ReLU.

    x_ref:     (1, H, W, Cin)      full input image block (bf16), resident in
                                   VMEM across row tiles (index_map ignores h)
    w_ref:     (9*Cin, Cout)       im2col weights, rows ordered (ky, kx, ci)
    scale_ref: (1, Cout)           folded BatchNorm scale (f32)
    bias_ref:  (1, Cout)           folded BatchNorm bias  (f32)
    slope_ref: (1, Cout)           per-channel negative slope (0.0 == ReLU)
    out_ref:   (1, tile_h, W, Cout) combined lane-dense output block (f32)
    """
    _, H, W, cin = x_ref.shape
    _, tile_h, _, cout = out_ref.shape
    h_idx = pl.program_id(1)
    nh = pl.num_programs(1)

    r0 = pl.multiple_of(h_idx * tile_h, tile_h)

    # Tile rows + 1-row halo gathered straight from the resident input block.
    # Halo rows outside the image are zero-masked at the value level, so every
    # grid step is independent (both grid axes can be "parallel").
    mid = x_ref[0, pl.ds(r0, tile_h), :, :]                          # (tile_h, W, cin)
    top = x_ref[0, pl.ds(jnp.maximum(r0 - 1, 0), 1), :, :]           # (1, W, cin)
    bot = x_ref[0, pl.ds(jnp.minimum(r0 + tile_h, H - 1), 1), :, :]  # (1, W, cin)
    top = top * (h_idx > 0).astype(top.dtype)
    bot = bot * (h_idx + 1 < nh).astype(bot.dtype)
    rows = jnp.concatenate([top, mid, bot], axis=0)                  # (tile_h+2, W, cin)

    # Left/right zero halo columns (bf16, value level).
    zcol = jnp.zeros((tile_h + 2, 1, cin), rows.dtype)
    slab = jnp.concatenate([zcol, rows, zcol], axis=1)               # (tile_h+2, W+2, cin)

    # 3 accumulating matmuls, one per kernel row dy (K = 3*cin each): 3x
    # smaller transient im2col footprint than a single 9-tap concat while
    # still keeping the MXU pipelined with long M = tile_h * W.
    acc = None
    for dy in range(3):
        rows_dy = slab[dy:dy + tile_h]                               # (tile_h, W+2, cin)
        taps = [rows_dy[:, dx:dx + W, :] for dx in range(3)]
        p = jnp.concatenate(taps, axis=-1).reshape(tile_h * W, 3 * cin)
        d = jnp.dot(p, w_ref[dy * 3 * cin:(dy + 1) * 3 * cin, :],
                    preferred_element_type=jnp.float32)
        acc = d if acc is None else acc + d

    y = acc * scale_ref[0] + bias_ref[0]                             # folded BN (f32)
    y = jnp.where(y >= 0, y, y * slope_ref[0])                       # per-channel leaky/ReLU
    out_ref[...] = y.reshape(1, tile_h, W, cout).astype(out_ref.dtype)


# ---------------------------------------------------------------------------
# Tile / VMEM sizing
# ---------------------------------------------------------------------------
def _vmem_estimate_bytes(H, W, cin, cout, tile_h):
    x_blk = 2 * H * W * cin * 2                 # bf16 input block, double-buffered
    w_blk = 2 * 9 * cin * cout * 2              # bf16 weights, double-buffered
    out_blk = 2 * tile_h * W * cout * 4         # f32 output block, double-buffered
    slab = (tile_h + 2) * (W + 2) * cin * 2     # bf16 halo slab (transient)
    patches = 2 * tile_h * W * 3 * cin * 2      # bf16 per-dy im2col (transient)
    acc = tile_h * W * cout * 4                 # f32 accumulator
    return x_blk + w_blk + out_blk + slab + patches + acc + (2 << 20)


def _pick_tile_h(H, W, cin, cout, *, max_tile=None, vmem_budget=40 << 20):
    limit = H if max_tile is None else min(H, max_tile)
    best = 1
    for t in range(1, limit + 1):
        if H % t:
            continue
        if _vmem_estimate_bytes(H, W, cin, cout, t) <= vmem_budget:
            best = t
    return best


# ---------------------------------------------------------------------------
# pallas_call wrapper: 1 or 2 convs sharing the same input, stacked on Cout
# ---------------------------------------------------------------------------
def fused_conv3x3_bn_act(x_nhwc, w_im2col, scale, bias, slope, *,
                         tile_h=None, max_tile=None,
                         vmem_budget_bytes=40 << 20, vmem_limit_bytes=None):
    """Bias-free 3x3 stride-1 SAME conv(s) + folded BN + per-channel activation.

    x_nhwc:   (N, H, W, Cin)
    w_im2col: (9*Cin, Cout)   HWIO weights flattened over (ky, kx, Cin)
    scale/bias/slope: (Cout,) per-output-channel f32 vectors
    Returns a single combined (N, H, W, Cout) f32 tensor (lane-dense stores);
    callers split branch channels with XLA slices.
    """
    N, H, W, Cin = x_nhwc.shape
    Cout = int(w_im2col.shape[-1])
    assert int(w_im2col.shape[0]) == 9 * Cin, (w_im2col.shape, Cin)

    if tile_h is None:
        tile_h = _pick_tile_h(H, W, Cin, Cout, max_tile=max_tile,
                              vmem_budget=vmem_budget_bytes)
    assert H % tile_h == 0, (H, tile_h)

    if vmem_limit_bytes is None:
        est = _vmem_estimate_bytes(H, W, Cin, Cout, tile_h)
        # Raise past v5e's 16 MiB default but stay safe on v7x's 64 MiB VMEM.
        vmem_limit_bytes = int(min(max(32 << 20, (est * 3) // 2), 48 << 20))

    grid_spec = pltpu.PrefetchScalarGridSpec(
        num_scalar_prefetch=0,
        grid=(N, H // tile_h),
        in_specs=[
            pl.BlockSpec((1, H, W, Cin), lambda n, h: (n, 0, 0, 0)),
            pl.BlockSpec((9 * Cin, Cout), lambda n, h: (0, 0)),
            pl.BlockSpec((1, Cout), lambda n, h: (0, 0)),
            pl.BlockSpec((1, Cout), lambda n, h: (0, 0)),
            pl.BlockSpec((1, Cout), lambda n, h: (0, 0)),
        ],
        out_specs=pl.BlockSpec((1, tile_h, W, Cout), lambda n, h: (n, h, 0, 0)),
    )
    return pl.pallas_call(
        _ssh_conv_kernel,
        grid_spec=grid_spec,
        out_shape=jax.ShapeDtypeStruct((N, H, W, Cout), jnp.float32),
        compiler_params=pltpu.CompilerParams(
            dimension_semantics=("parallel", "parallel"),
            vmem_limit_bytes=vmem_limit_bytes),
    )(x_nhwc.astype(jnp.bfloat16),
      w_im2col.astype(jnp.bfloat16),
      scale.reshape(1, -1).astype(jnp.float32),
      bias.reshape(1, -1).astype(jnp.float32),
      slope.reshape(1, -1).astype(jnp.float32))


# ---------------------------------------------------------------------------
# Parameters (Conv2d bias=False + BatchNorm folded to scale/bias)
# ---------------------------------------------------------------------------
def _fold_bn(gamma, beta, mean, var, eps=1e-5):
    scale = gamma / jnp.sqrt(var + eps)
    bias = beta - mean * scale
    return scale, bias


def init_ssh_params(key, in_channel, out_channel):
    assert out_channel % 4 == 0
    c_half = out_channel // 2
    c_quarter = out_channel // 4

    def conv_bn(key, cin, cout):
        kw, kg, kb, km, kv = jax.random.split(key, 5)
        fan_in = cin * 9
        w = jax.random.normal(kw, (3, 3, cin, cout), jnp.float32) \
            * (1.0 / jnp.sqrt(fan_in))
        gamma = 1.0 + 0.1 * jax.random.normal(kg, (cout,), jnp.float32)
        beta = 0.1 * jax.random.normal(kb, (cout,), jnp.float32)
        mean = 0.1 * jax.random.normal(km, (cout,), jnp.float32)
        var = jnp.abs(1.0 + 0.1 * jax.random.normal(kv, (cout,), jnp.float32))
        scale, bias = _fold_bn(gamma, beta, mean, var)
        return {"w": w, "scale": scale, "bias": bias}

    keys = jax.random.split(key, 5)
    return {
        "conv3X3":   conv_bn(keys[0], in_channel, c_half),
        "conv5X5_1": conv_bn(keys[1], in_channel, c_quarter),
        "conv5X5_2": conv_bn(keys[2], c_quarter, c_quarter),
        "conv7X7_2": conv_bn(keys[3], c_quarter, c_quarter),
        "conv7x7_3": conv_bn(keys[4], c_quarter, c_quarter),
    }


def _im2col_w(p):
    w = p["w"]                                  # (3, 3, Cin, Cout) HWIO
    return w.reshape(-1, w.shape[-1])           # (9*Cin, Cout), (ky, kx, ci) order


# ---------------------------------------------------------------------------
# SSH forward
# ---------------------------------------------------------------------------
def ssh_forward_nhwc(params, x_nhwc, *, out_channel, tile_h=None):
    """SSH forward in NHWC (transpose-free path)."""
    leaky = 0.1 if out_channel <= 64 else 0.0
    c_half, c_q = out_channel // 2, out_channel // 4
    p = params

    # Call A: conv3X3 (final ReLU folded, slope 0) || conv5X5_1 (+LeakyReLU)
    wA = jnp.concatenate([_im2col_w(p["conv3X3"]), _im2col_w(p["conv5X5_1"])], axis=-1)
    sA = jnp.concatenate([p["conv3X3"]["scale"], p["conv5X5_1"]["scale"]])
    bA = jnp.concatenate([p["conv3X3"]["bias"], p["conv5X5_1"]["bias"]])
    slA = jnp.concatenate([jnp.zeros((c_half,), jnp.float32),
                           jnp.full((c_q,), leaky, jnp.float32)])
    outA = fused_conv3x3_bn_act(x_nhwc, wA, sA, bA, slA, tile_h=tile_h)
    y3 = outA[..., :c_half]
    t = outA[..., c_half:].astype(jnp.bfloat16)

    # Call B: conv5X5_2 (final ReLU folded) || conv7X7_2 (+LeakyReLU), share t
    wB = jnp.concatenate([_im2col_w(p["conv5X5_2"]), _im2col_w(p["conv7X7_2"])], axis=-1)
    sB = jnp.concatenate([p["conv5X5_2"]["scale"], p["conv7X7_2"]["scale"]])
    bB = jnp.concatenate([p["conv5X5_2"]["bias"], p["conv7X7_2"]["bias"]])
    slB = jnp.concatenate([jnp.zeros((c_q,), jnp.float32),
                           jnp.full((c_q,), leaky, jnp.float32)])
    outB = fused_conv3x3_bn_act(t, wB, sB, bB, slB, tile_h=tile_h)
    y5 = outB[..., :c_q]
    u = outB[..., c_q:].astype(jnp.bfloat16)

    # Call C: conv7x7_3 (final ReLU folded)
    wC = _im2col_w(p["conv7x7_3"])
    slC = jnp.zeros((c_q,), jnp.float32)
    y7 = fused_conv3x3_bn_act(u, wC, p["conv7x7_3"]["scale"],
                              p["conv7x7_3"]["bias"], slC, tile_h=tile_h)

    # ReLU already applied per branch (distributes over concat).
    # TODO(synk): write each branch's channel slice directly into a donated
    # (N,H,W,out_channel) buffer (input_output_aliases) to skip this final
    # HBM concat round-trip on the memory-bound tail.
    return jnp.concatenate([y3, y5, y7], axis=-1)


def ssh_forward(params, x_nchw, *, out_channel, tile_h=None):
    """NCHW entry point matching the PyTorch module; NCHW<->NHWC transposes
    happen once at this boundary only (use ssh_forward_nhwc to avoid them)."""
    x_nhwc = jnp.transpose(x_nchw, (0, 2, 3, 1))
    out = ssh_forward_nhwc(params, x_nhwc, out_channel=out_channel, tile_h=tile_h)
    return jnp.transpose(out, (0, 3, 1, 2))


# ---------------------------------------------------------------------------
# Pure-JAX reference (mirrors kernel numerics: bf16 matmul inputs, f32 accum,
# bf16 intermediates) for correctness checking.
# ---------------------------------------------------------------------------
def _reference_forward(params, x_nchw, *, out_channel):
    leaky = 0.1 if out_channel <= 64 else 0.0
    x = jnp.transpose(x_nchw, (0, 2, 3, 1))

    def cba(xin, q, slope):
        y = jax.lax.conv_general_dilated(
            xin.astype(jnp.bfloat16), q["w"].astype(jnp.bfloat16),
            window_strides=(1, 1), padding="SAME",
            dimension_numbers=("NHWC", "HWIO", "NHWC"),
            preferred_element_type=jnp.float32)
        y = y * q["scale"] + q["bias"]
        return jnp.where(y >= 0, y, slope * y)

    y3 = cba(x, params["conv3X3"], 0.0)
    t = cba(x, params["conv5X5_1"], leaky).astype(jnp.bfloat16)
    y5 = cba(t, params["conv5X5_2"], 0.0)
    u = cba(t, params["conv7X7_2"], leaky).astype(jnp.bfloat16)
    y7 = cba(u, params["conv7x7_3"], 0.0)
    out = jnp.concatenate([y3, y5, y7], axis=-1)
    return jnp.transpose(out, (0, 3, 1, 2))


if __name__ == "__main__":
    key = jax.random.PRNGKey(0)
    k_param, k_x = jax.random.split(key)

    N, in_channel, H, W = 2, 8, 16, 16
    out_channel = 16            # multiple of 4; <= 64 so leaky slope = 0.1

    params = init_ssh_params(k_param, in_channel, out_channel)
    x = jax.random.normal(k_x, (N, in_channel, H, W), jnp.float32)  # NCHW

    out = jax.block_until_ready(ssh_forward(params, x, out_channel=out_channel))
    assert out.shape == (N, out_channel, H, W), out.shape

    ref = jax.block_until_ready(
        _reference_forward(params, x, out_channel=out_channel))
    max_err = float(jnp.max(jnp.abs(out - ref)))
    assert bool(jnp.allclose(out, ref, atol=1e-2, rtol=1e-2)), max_err

    print("KERNEL_OK")
</pallas_src>

<mosaic_0001>
module attributes {stable_mosaic.version = 11 : i64} {
  func.func @_ssh_conv_kernel(%arg0: i32, %arg1: i32, %arg2: memref<1x16x16x8xbf16, #tpu.memory_space<vmem>>, %arg3: memref<72x12xbf16, #tpu.memory_space<vmem>>, %arg4: memref<1x12xf32, #tpu.memory_space<vmem>>, %arg5: memref<1x12xf32, #tpu.memory_space<vmem>>, %arg6: memref<1x12xf32, #tpu.memory_space<vmem>>, %arg7: memref<1x16x16x12xf32, #tpu.memory_space<vmem>>) attributes {dimension_semantics = [#tpu.dimension_semantics<parallel>, #tpu.dimension_semantics<parallel>], iteration_bounds = array<i64: 2, 1>, scalar_prefetch = 0 : i64, scratch_operands = 0 : i64, tpu.core_type = #tpu.core_type<tc>, window_params = [{transform_indices = @transform_0, window_bounds = array<i64: 1, 16, 16, 8>}, {pipeline_mode = #tpu.pipeline_mode<synchronous>, transform_indices = @transform_1, window_bounds = array<i64: 72, 12>}, {pipeline_mode = #tpu.pipeline_mode<synchronous>, transform_indices = @transform_2, window_bounds = array<i64: 1, 12>}, {pipeline_mode = #tpu.pipeline_mode<synchronous>, transform_indices = @transform_3, window_bounds = array<i64: 1, 12>}, {pipeline_mode = #tpu.pipeline_mode<synchronous>, transform_indices = @transform_4, window_bounds = array<i64: 1, 12>}, {transform_indices = @transform_5, window_bounds = array<i64: 1, 16, 16, 12>}]} {
    %c16_i32 = arith.constant 16 : i32
    %0 = arith.muli %arg1, %c16_i32 : i32
    %1 = tpu.assume_multiple %0, 16 : i32
    %c0 = arith.constant 0 : index
    %2 = arith.index_cast %1 : i32 to index
    %c0_0 = arith.constant 0 : index
    %c0_1 = arith.constant 0 : index
    %3 = vector.load %arg2[%c0, %2, %c0_0, %c0_1] : memref<1x16x16x8xbf16, #tpu.memory_space<vmem>>, vector<1x16x16x8xbf16>
    %4 = vector.shape_cast %3 : vector<1x16x16x8xbf16> to vector<16x16x8xbf16>
    %c1_i32 = arith.constant 1 : i32
    %5 = arith.subi %1, %c1_i32 : i32
    %c0_i32 = arith.constant 0 : i32
    %6 = arith.maxsi %5, %c0_i32 : i32
    %c0_2 = arith.constant 0 : index
    %7 = arith.index_cast %6 : i32 to index
    %c0_3 = arith.constant 0 : index
    %c0_4 = arith.constant 0 : index
    %8 = vector.load %arg2[%c0_2, %7, %c0_3, %c0_4] : memref<1x16x16x8xbf16, #tpu.memory_space<vmem>>, vector<1x1x16x8xbf16>
    %9 = vector.shape_cast %8 : vector<1x1x16x8xbf16> to vector<1x16x8xbf16>
    %c16_i32_5 = arith.constant 16 : i32
    %10 = arith.addi %1, %c16_i32_5 : i32
    %c15_i32 = arith.constant 15 : i32
    %11 = arith.minsi %10, %c15_i32 : i32
    %c0_6 = arith.constant 0 : index
    %12 = arith.index_cast %11 : i32 to index
    %c0_7 = arith.constant 0 : index
    %c0_8 = arith.constant 0 : index
    %13 = vector.load %arg2[%c0_6, %12, %c0_7, %c0_8] : memref<1x16x16x8xbf16, #tpu.memory_space<vmem>>, vector<1x1x16x8xbf16>
    %14 = vector.shape_cast %13 : vector<1x1x16x8xbf16> to vector<1x16x8xbf16>
    %c0_i32_9 = arith.constant 0 : i32
    %15 = arith.cmpi sgt, %arg1, %c0_i32_9 : i32
    %16 = arith.extui %15 : i1 to i32
    %17 = arith.sitofp %16 : i32 to f32
    %18 = arith.truncf %17 : f32 to bf16
    %19 = vector.broadcast %18 : bf16 to vector<1x16x8xbf16>
    %20 = arith.mulf %9, %19 : vector<1x16x8xbf16>
    %c1_i32_10 = arith.constant 1 : i32
    %21 = arith.addi %arg1, %c1_i32_10 : i32
    %c1_i32_11 = arith.constant 1 : i32
    %22 = arith.cmpi slt, %21, %c1_i32_11 : i32
    %23 = arith.extui %22 : i1 to i32
    %24 = arith.sitofp %23 : i32 to f32
    %25 = arith.truncf %24 : f32 to bf16
    %26 = vector.broadcast %25 : bf16 to vector<1x16x8xbf16>
    %27 = arith.mulf %14, %26 : vector<1x16x8xbf16>
    %28 = tpu.concatenate %20, %4, %27 in 0 : vector<1x16x8xbf16>, vector<16x16x8xbf16>, vector<1x16x8xbf16> -> vector<18x16x8xbf16>
    %cst = arith.constant 0.000000e+00 : bf16
    %29 = vector.broadcast %cst : bf16 to vector<18x1x8xbf16>
    %30 = tpu.concatenate %29, %28, %29 in 1 : vector<18x1x8xbf16>, vector<18x16x8xbf16>, vector<18x1x8xbf16> -> vector<18x18x8xbf16>
    %31 = vector.extract_strided_slice %30 {offsets = [0, 0, 0], sizes = [16, 18, 8], strides = [1, 1, 1]} : vector<18x18x8xbf16> to vector<16x18x8xbf16>
    %32 = vector.extract_strided_slice %31 {offsets = [0, 0, 0], sizes = [16, 16, 8], strides = [1, 1, 1]} : vector<16x18x8xbf16> to vector<16x16x8xbf16>
    %33 = vector.extract_strided_slice %31 {offsets = [0, 1, 0], sizes = [16, 16, 8], strides = [1, 1, 1]} : vector<16x18x8xbf16> to vector<16x16x8xbf16>
    %34 = vector.extract_strided_slice %31 {offsets = [0, 2, 0], sizes = [16, 16, 8], strides = [1, 1, 1]} : vector<16x18x8xbf16> to vector<16x16x8xbf16>
    %35 = tpu.concatenate %32, %33, %34 in 2 : vector<16x16x8xbf16>, vector<16x16x8xbf16>, vector<16x16x8xbf16> -> vector<16x16x24xbf16>
    %36 = vector.shape_cast %35 : vector<16x16x24xbf16> to vector<256x24xbf16>
    %c0_12 = arith.constant 0 : index
    %c0_13 = arith.constant 0 : index
    %37 = vector.load %arg3[%c0_12, %c0_13] : memref<72x12xbf16, #tpu.memory_space<vmem>>, vector<24x12xbf16>
    %cst_14 = arith.constant dense<0.000000e+00> : vector<256x12xf32>
    %38 = tpu.matmul %36, %37, %cst_14 {dimension_numbers = #tpu.dot_dimension_numbers<[1], [0], [0], [1], [0, 0, 1, 1], [], []>} : vector<256x24xbf16>, vector<24x12xbf16>, vector<256x12xf32> -> vector<256x12xf32>
    %39 = vector.extract_strided_slice %30 {offsets = [1, 0, 0], sizes = [16, 18, 8], strides = [1, 1, 1]} : vector<18x18x8xbf16> to vector<16x18x8xbf16>
    %40 = vector.extract_strided_slice %39 {offsets = [0, 0, 0], sizes = [16, 16, 8], strides = [1, 1, 1]} : vector<16x18x8xbf16> to vector<16x16x8xbf16>
    %41 = vector.extract_strided_slice %39 {offsets = [0, 1, 0], sizes = [16, 16, 8], strides = [1, 1, 1]} : vector<16x18x8xbf16> to vector<16x16x8xbf16>
    %42 = vector.extract_strided_slice %39 {offsets = [0, 2, 0], sizes = [16, 16, 8], strides = [1, 1, 1]} : vector<16x18x8xbf16> to vector<16x16x8xbf16>
    %43 = tpu.concatenate %40, %41, %42 in 2 : vector<16x16x8xbf16>, vector<16x16x8xbf16>, vector<16x16x8xbf16> -> vector<16x16x24xbf16>
    %44 = vector.shape_cast %43 : vector<16x16x24xbf16> to vector<256x24xbf16>
    %c24 = arith.constant 24 : index
    %c0_15 = arith.constant 0 : index
    %45 = vector.load %arg3[%c24, %c0_15] : memref<72x12xbf16, #tpu.memory_space<vmem>>, vector<24x12xbf16>
    %cst_16 = arith.constant dense<0.000000e+00> : vector<256x12xf32>
    %46 = tpu.matmul %44, %45, %cst_16 {dimension_numbers = #tpu.dot_dimension_numbers<[1], [0], [0], [1], [0, 0, 1, 1], [], []>} : vector<256x24xbf16>, vector<24x12xbf16>, vector<256x12xf32> -> vector<256x12xf32>
    %47 = arith.addf %38, %46 : vector<256x12xf32>
    %48 = vector.extract_strided_slice %30 {offsets = [2, 0, 0], sizes = [16, 18, 8], strides = [1, 1, 1]} : vector<18x18x8xbf16> to vector<16x18x8xbf16>
    %49 = vector.extract_strided_slice %48 {offsets = [0, 0, 0], sizes = [16, 16, 8], strides = [1, 1, 1]} : vector<16x18x8xbf16> to vector<16x16x8xbf16>
    %50 = vector.extract_strided_slice %48 {offsets = [0, 1, 0], sizes = [16, 16, 8], strides = [1, 1, 1]} : vector<16x18x8xbf16> to vector<16x16x8xbf16>
    %51 = vector.extract_strided_slice %48 {offsets = [0, 2, 0], sizes = [16, 16, 8], strides = [1, 1, 1]} : vector<16x18x8xbf16> to vector<16x16x8xbf16>
    %52 = tpu.concatenate %49, %50, %51 in 2 : vector<16x16x8xbf16>, vector<16x16x8xbf16>, vector<16x16x8xbf16> -> vector<16x16x24xbf16>
    %53 = vector.shape_cast %52 : vector<16x16x24xbf16> to vector<256x24xbf16>
    %c48 = arith.constant 48 : index
    %c0_17 = arith.constant 0 : index
    %54 = vector.load %arg3[%c48, %c0_17] : memref<72x12xbf16, #tpu.memory_space<vmem>>, vector<24x12xbf16>
    %cst_18 = arith.constant dense<0.000000e+00> : vector<256x12xf32>
    %55 = tpu.matmul %53, %54, %cst_18 {dimension_numbers = #tpu.dot_dimension_numbers<[1], [0], [0], [1], [0, 0, 1, 1], [], []>} : vector<256x24xbf16>, vector<24x12xbf16>, vector<256x12xf32> -> vector<256x12xf32>
    %56 = arith.addf %47, %55 : vector<256x12xf32>
    %c0_19 = arith.constant 0 : index
    %c0_20 = arith.constant 0 : index
    %57 = vector.load %arg4[%c0_19, %c0_20] : memref<1x12xf32, #tpu.memory_space<vmem>>, vector<1x12xf32>
    %58 = vector.shape_cast %57 : vector<1x12xf32> to vector<12xf32>
    %59 = vector.shape_cast %58 : vector<12xf32> to vector<1x12xf32>
    %60 = vector.broadcast %59 : vector<1x12xf32> to vector<256x12xf32>
    %61 = arith.mulf %56, %60 : vector<256x12xf32>
    %c0_21 = arith.constant 0 : index
    %c0_22 = arith.constant 0 : index
    %62 = vector.load %arg5[%c0_21, %c0_22] : memref<1x12xf32, #tpu.memory_space<vmem>>, vector<1x12xf32>
    %63 = vector.shape_cast %62 : vector<1x12xf32> to vector<12xf32>
    %64 = vector.shape_cast %63 : vector<12xf32> to vector<1x12xf32>
    %65 = vector.broadcast %64 : vector<1x12xf32> to vector<256x12xf32>
    %66 = arith.addf %61, %65 : vector<256x12xf32>
    %cst_23 = arith.constant 0.000000e+00 : f32
    %67 = vector.broadcast %cst_23 : f32 to vector<256x12xf32>
    %68 = arith.cmpf oge, %66, %67 : vector<256x12xf32>
    %c0_24 = arith.constant 0 : index
    %c0_25 = arith.constant 0 : index
    %69 = vector.load %arg6[%c0_24, %c0_25] : memref<1x12xf32, #tpu.memory_space<vmem>>, vector<1x12xf32>
    %70 = vector.shape_cast %69 : vector<1x12xf32> to vector<12xf32>
    %71 = vector.shape_cast %70 : vector<12xf32> to vector<1x12xf32>
    %72 = vector.broadcast %71 : vector<1x12xf32> to vector<256x12xf32>
    %73 = arith.mulf %66, %72 : vector<256x12xf32>
    %74 = arith.select %68, %66, %73 : vector<256x12xi1>, vector<256x12xf32>
    %75 = vector.shape_cast %74 : vector<256x12xf32> to vector<1x16x16x12xf32>
    %c0_26 = arith.constant 0 : index
    %c0_27 = arith.constant 0 : index
    %c0_28 = arith.constant 0 : index
    %c0_29 = arith.constant 0 : index
    %76 = vector.load %arg7[%c0_26, %c0_27, %c0_28, %c0_29] : memref<1x16x16x12xf32, #tpu.memory_space<vmem>>, vector<1x16x16x12xf32>
    tpu.vector_store %arg7[%c0_26, %c0_27, %c0_28, %c0_29], %75 {strides = array<i32>} : memref<1x16x16x12xf32, #tpu.memory_space<vmem>>, vector<1x16x16x12xf32>,
    return
  }
  func.func @transform_0(%arg0: i32, %arg1: i32) -> (i32, i32, i32, i32) {
    %c0_i32 = arith.constant 0 : i32
    %c0_i32_0 = arith.constant 0 : i32
    %c0_i32_1 = arith.constant 0 : i32
    %c0_i32_2 = arith.constant 0 : i32
    return %arg0, %c0_i32, %c0_i32_0, %c0_i32_1 : i32, i32, i32, i32
  }
  func.func @transform_1(%arg0: i32, %arg1: i32) -> (i32, i32) {
    %c0_i32 = arith.constant 0 : i32
    %c0_i32_0 = arith.constant 0 : i32
    %c0_i32_1 = arith.constant 0 : i32
    return %c0_i32, %c0_i32_0 : i32, i32
  }
  func.func @transform_2(%arg0: i32, %arg1: i32) -> (i32, i32) {
    %c0_i32 = arith.constant 0 : i32
    %c0_i32_0 = arith.constant 0 : i32
    %c0_i32_1 = arith.constant 0 : i32
    return %c0_i32, %c0_i32_0 : i32, i32
  }
  func.func @transform_3(%arg0: i32, %arg1: i32) -> (i32, i32) {
    %c0_i32 = arith.constant 0 : i32
    %c0_i32_0 = arith.constant 0 : i32
    %c0_i32_1 = arith.constant 0 : i32
    return %c0_i32, %c0_i32_0 : i32, i32
  }
  func.func @transform_4(%arg0: i32, %arg1: i32) -> (i32, i32) {
    %c0_i32 = arith.constant 0 : i32
    %c0_i32_0 = arith.constant 0 : i32
    %c0_i32_1 = arith.constant 0 : i32
    return %c0_i32, %c0_i32_0 : i32, i32
  }
  func.func @transform_5(%arg0: i32, %arg1: i32) -> (i32, i32, i32, i32) {
    %c0_i32 = arith.constant 0 : i32
    %c0_i32_0 = arith.constant 0 : i32
    %c0_i32_1 = arith.constant 0 : i32
    return %arg0, %arg1, %c0_i32, %c0_i32_0 : i32, i32, i32, i32
  }
}

</mosaic_0001>

<bundles_post_ra>
// kernel: tpu_custom_call.1
= control target key start
LH: loop header
LB: loop body
LE: loop exit
PB: predicated region body
PF: predicated region fallthrough
CT: control target
= control target key end

     0   :  { %s2037_s18 = smov 0   ;;  %s2039_s19 = smov 0   ;;  %s2757_s0 = inlined_call_operand.vmem [shape: bf16[2,16,16,8], index: 0, kind: input, shape index: {}]   ;;  %s2758_s1 = inlined_call_operand.vmem [shape: bf16[72,12], index: 1, kind: input, shape index: {}]   ;;  %s2759_s2 = inlined_call_operand.vmem [shape: f32[1,12], index: 2, kind: input, shape index: {}]   ;;  %s2760_s3 = inlined_call_operand.vmem [shape: f32[1,12], index: 3, kind: input, shape index: {}]   ;;  %s2761_s4 = inlined_call_operand.vmem [shape: f32[1,12], index: 4, kind: input, shape index: {}]   ;;  %s2762_s5 = inlined_call_operand.vmem [shape: f32[2,16,16,12], index: 5, kind: output, shape index: {}]  }
   0x1   :  { %s2041_s20 = smov 0  }
   0x2 LB: > { %s27_s21 = sadd.s32 1, %s1998_s19  ;;  %p1781_p0 = scmp.ge.s32.totalorder %s2002_s20, 1  ;;  %s2002_s20 = sphi %s2041_s20, %s15_s20   ;;  %s1998_s19 = sphi %s2039_s19, %s2766_s19   ;;  %s1994_s18 = sphi %s2037_s18, %s2765_s18  }
   0x3   : > { %p29_p1 = scmp.ge.s32.totalorder %s27_s21, 2  ;;  %p201_p2 = scmp.lt.s32.totalorder %s2002_s20, 3 }
   0x5   : > { %s2768_s21 = smov (%p29_p1, %s27_s21), 0  ;;  %p202_p3 = pnand %p1781_p0, %p201_p2 }
   0x6   : > { %p234_p4 = scmp.lt.s32.totalorder (!%p202_p3), %s1994_s18, 1  ;;  %s2005_s26 = smov (!%p202_p3), 16  }
   0x7   : > { %205 = sbr.rel (%p202_p3) target bundleno = 484 (0x1e4), region = 40  ;;  %s2006_s27 = smov (!%p202_p3), 8  }
   0xc   : > { %s2770_s18 = smov (!%p234_p4, %s1994_s18), 1  ;;  %vm604_vm0 = vcmask 1040384   ;;  %vm605_vm1 = vsmask.f32 256  ;;  %v2004_v12 = vmov 0.0   ;;  %vm900_vm3 = vcmask 1046528  }
   0xd   : > { %s1914_s22 = sshll.u32 %s2770_s18, 7  ;;  %vm2070_vm2 = vmand %vm604_vm0, %vm605_vm1  ;;  %v2074_v13 = vunpack.c.l.bf16 %v2004_v12  ;;  %vm643_vm4 = vsmask.f32 7424  ;;  %vm1120_vm5 = vcmask 1043456   ;;  %vm981_vm6 = vcmask 64512  }
   0xe   : > { %s2061_s25 = scalar_lea.vmem %s2757_s0, %s1914_s22  ;;  %vm1014_vm7 = vcmask 130048   ;;  %vm1087_vm8 = vcmask 195584   ;;  %vm1651_vm10 = vcmask 97280  }
   0xf   : > { %v1917_v0 = vld [vmem:[%s2061_s25 + $0x8] sm:$0xff]  ;;  %v1928_v1 = vld [vmem:[%s2061_s25 + $0x60] sm:$0xff]  ;;  %v2068_v4 = vld [vmem:[%s2061_s25 + $0x10] sm:$0xff] }
  0x10   : > { %v1916_v2 = vld [vmem:[%s2061_s25] sm:$0xff]  ;;  %v457_v5 = vshrl.u32 %v1917_v0, 16  ;;  %v460_v6 = vshll.u32 %v1917_v0, 16  ;;  %v534_v7 = vshrl.u32 %v1928_v1, 16  ;;  %v537_v8 = vshll.u32 %v1928_v1, 16  ;;  %v1929_v20 = vld [vmem:[%s2061_s25 + $0x68] sm:$0xff] }
  0x11   : > { %v1936_v3 = vld [vmem:[%s2061_s25] sm:$0xff]   ;;  %v450_v10 = vshrl.u32 %v1916_v2, 16  ;;  %v453_v16 = vshll.u32 %v1916_v2, 16  ;;  %v464_v19 = vshrl.u32 %v2068_v4, 16  ;;  %v467_v24 = vshll.u32 %v2068_v4, 16  ;;  %v1919_v2 = vld [vmem:[%s2061_s25 + $0x18] sm:$0xff] }
  0x12   : > { %v1937_v11 = vunpack.c.l.bf16 %v1936_v3  ;;  %v459_v14 = vrot.slane %v457_v5, 7  ;;  %v536_v15 = vrot.slane %v534_v7, 7  ;;  %v1938_v17 = vunpack.c.h.bf16 %v1936_v3 }
  0x13   : > { %v452_v18 = vrot.slane %v450_v10, 7  ;;  %v541_v36 = vshrl.u32 %v1929_v20, 16  ;;  %v466_v51 = vrot.slane %v464_v19, 7  ;;  %v544_v54 = vshll.u32 %v1929_v20, 16 }
  0x14   : > { %v462_v21 = vor.u32 %v460_v6, %v459_v14  ;;  %v627_v22 = vsel %vm2070_vm2, %v459_v14, 0  ;;  %v539_v23 = vor.u32 %v537_v8, %v536_v15  ;;  %v638_v27 = vsel %vm2070_vm2, %v536_v15, 0  ;;  %v1930_v6 = vld [vmem:[%s2061_s25 + $0x70] sm:$0xff] }
  0x15   : > { %v908_v25 = vrot.slane %v627_v22, 1  ;;  %v676_v26 = vshll.u32 %v627_v22, 16  ;;  %v323_v28 = vmul.f32 %v1937_v11, %v2074_v13  ;;  %v455_v31 = vor.u32 %v453_v16, %v452_v18 }
  0x16   : > { %v2086_v29 = vsel %vm2070_vm2, 0, %v462_v21  ;;  %v2090_v30 = vsel %vm2070_vm2, 0, %v539_v23  ;;  %v324_v32 = vmul.f32 %v1938_v17, %v2074_v13  ;;  %v941_v37 = vrot.slane %v638_v27, 1 }
  0x17   : > { %v907_v33 = vrot.slane %v2086_v29, 1  ;;  %v669_v34 = vshrl.u32 %v2086_v29, 16  ;;  %v671_v35 = vshll.u32 %v2086_v29, 16  ;;  %v803_v38 = vshll.u32 %v2090_v30, 16 }
  0x18   : > { %v808_v39 = vshll.u32 %v638_v27, 16  ;;  %v626_v40 = vsel %vm2070_vm2, %v452_v18, 0  ;;  %v678_v43 = vrot.slane %v676_v26, 1  ;;  %v940_v44 = vrot.slane %v2090_v30, 1 }
  0x19   : > { %v909_v41 = vsel %vm900_vm3, %v907_v33, %v908_v25  ;;  %v673_v42 = vrot.slane %v671_v35, 1  ;;  %v801_v45 = vshrl.u32 %v2090_v30, 16  ;;  %v805_v46 = vrot.slane %v803_v38, 1 }
  0x1a   : > { %953 = vrot.lane.b32.xlu1 %v909_v41, %s2005_s26  ;;  %v2105_v47 = vsel %vm2070_vm2, 0, %v455_v31  ;;  %v325_v48 = vpack.c.bf16 %v323_v28, %v323_v28  ;;  %v326_v50 = vpack.c.bf16 %v324_v32, %v324_v32  ;;  %v543_v52 = vrot.slane %v541_v36, 7 }
  0x1b   : > { %v674_v49 = vor.u32 %v673_v42, %v669_v34  ;;  %v904_v56 = vrot.slane %v2105_v47, 1  ;;  %v905_v57 = vrot.slane %v626_v40, 1  ;;  %v806_v59 = vor.u32 %v805_v46, %v801_v45 }
  0x1c   : > { %v388_v53 = vunpack.c.l.b16 %v325_v48  ;;  %v389_v58 = vunpack.c.l.b16 %v326_v50  ;;  %v810_v60 = vrot.slane %v808_v39, 1  ;;  %v546_v61 = vor.u32 %v544_v54, %v543_v52 }
  0x1d   : > { %v679_v55 = vsel %vm643_vm4, %v674_v49, %v678_v43  ;;  %v942_v62 = vsel %vm900_vm3, %v940_v44, %v941_v37  ;;  %v469_v0 = vor.u32 %v467_v24, %v466_v51  ;;  %v2113_v1 = vsel %vm2070_vm2, %v466_v51, 0  ;;  %v1920_v49 = vld [vmem:[%s2061_s25 + $0x20] sm:$0xff] }
  0x1e   : > { %840 = vrot.lane.b32.xlu0 %v679_v55, %s2006_s27  ;;  %v424_v63 = vpack.c.b16 %v389_v58, %v388_v53  ;;  %v657_v3 = vshrl.u32 %v2105_v47, 16  ;;  %v659_v4 = vshll.u32 %v2105_v47, 16  ;;  %v664_v5 = vshll.u32 %v626_v40, 16 }
  0x1f   : > { %v906_v7 = vsel %vm900_vm3, %v904_v56, %v905_v57  ;;  %v2122_v11 = vsel %vm2070_vm2, 0, %v546_v61  ;;  %v811_v12 = vsel %vm643_vm4, %v806_v59, %v810_v60  ;;  %v911_v14 = vrot.slane %v2113_v1, 1 }
  0x20   : > { %v443_v8 = vshrl.u32 %v424_v63, 16  ;;  %v446_v10 = vshll.u32 %v424_v63, 16  ;;  %v661_v15 = vrot.slane %v659_v4, 1  ;;  %v666_v16 = vrot.slane %v664_v5, 1 }
  0x21   : > { %v2129_v18 = vsel %vm2070_vm2, 0, %v469_v0  ;;  %v471_v19 = vshrl.u32 %v1919_v2, 16  ;;  %v474_v20 = vshll.u32 %v1919_v2, 16  ;;  %v2133_v21 = vsel %vm2070_vm2, %v543_v52, 0 }
  0x22   : > { %975 = vrot.lane.b32.xlu1 %v942_v62, %s2005_s26  ;;  %v445_v17 = vrot.slane %v443_v8, 7  ;;  %v815_v22 = vshll.u32 %v2122_v11, 16  ;;  %v662_v23 = vor.u32 %v661_v15, %v657_v3  ;;  %v548_v24 = vshrl.u32 %v1930_v6, 16  ;;  %v1931_v8 = vld [vmem:[%s2061_s25 + $0x78] sm:$0xff] }
  0x23   : > { %v473_v27 = vrot.slane %v471_v19, 7  ;;  %v551_v28 = vshll.u32 %v1930_v6, 16  ;;  %v910_v31 = vrot.slane %v2129_v18, 1  ;;  %v820_v37 = vshll.u32 %v2133_v21, 16 }
  0x24   : > { %v448_v25 = vor.u32 %v446_v10, %v445_v17  ;;  %v625_v26 = vsel %vm2070_vm2, %v445_v17, 0  ;;  %v667_v32 = vsel %vm643_vm4, %v662_v23, %v666_v16  ;;  %v550_v34 = vrot.slane %v548_v24, 7 }
  0x25   : > { %v652_v33 = vshll.u32 %v625_v26, 16  ;;  %v902_v36 = vrot.slane %v625_v26, 1  ;;  %838 = vrot.lane.b32.xlu2 %v667_v32, %s2006_s27  ;;  %v476_v38 = vor.u32 %v474_v20, %v473_v27  ;;  %v813_v40 = vshrl.u32 %v2122_v11, 16 }
  0x26   : > { %862 = vrot.lane.b32.xlu0 %v811_v12, %s2006_s27  ;;  %v2143_v35 = vsel %vm2070_vm2, 0, %v448_v25  ;;  %v817_v41 = vrot.slane %v815_v22, 1  ;;  %v553_v44 = vor.u32 %v551_v28, %v550_v34  ;;  %v912_v45 = vsel %vm900_vm3, %v910_v31, %v911_v14  ;;  %v1927_v25 = vld [vmem:[%s2061_s25 + $0x58] sm:$0xff] }
  0x27   : > { %v901_v39 = vrot.slane %v2143_v35, 1  ;;  %v647_v42 = vshll.u32 %v2143_v35, 16  ;;  %v645_v43 = vshrl.u32 %v2143_v35, 16  ;;  %v2155_v46 = vsel %vm2070_vm2, 0, %v476_v38 }
  0x28   : > { %v654_v48 = vrot.slane %v652_v33, 1  ;;  %v2161_v52 = vsel %vm2070_vm2, 0, %v553_v44  ;;  %v2165_v53 = vsel %vm2070_vm2, %v550_v34, 0  ;;  %v818_v54 = vor.u32 %v817_v41, %v813_v40 }
  0x29   : > { %v903_v50 = vsel %vm900_vm3, %v901_v39, %v902_v36  ;;  %v649_v51 = vrot.slane %v647_v42, 1  ;;  %v822_v55 = vrot.slane %v820_v37, 1  ;;  %v827_v56 = vshll.u32 %v2161_v52, 16  ;;  %v1921_v37 = vld [vmem:[%s2061_s25 + $0x28] sm:$0xff] }
  0x2a   : > { %951 = vrot.lane.b32.xlu1 %v906_v7, %s2005_s26  ;;  %v681_v57 = vshrl.u32 %v2129_v18, 16  ;;  %v2171_v58 = vsel %vm2070_vm2, %v473_v27, 0  ;;  %v683_v60 = vshll.u32 %v2129_v18, 16  ;;  %v688_v61 = vshll.u32 %v2113_v1, 16 }
  0x2b   : > { %v650_v59 = vor.u32 %v649_v51, %v645_v43  ;;  %v695_v62 = vshll.u32 %v2155_v46, 16  ;;  %v825_v63 = vshrl.u32 %v2161_v52, 16  ;;  %v832_v0 = vshll.u32 %v2165_v53, 16 }
  0x2c   : > { %v478_v2 = vshrl.u32 %v1920_v49, 16  ;;  %v829_v4 = vrot.slane %v827_v56, 1  ;;  %v685_v5 = vrot.slane %v683_v60, 1  ;;  %v481_v6 = vshll.u32 %v1920_v49, 16 }
  0x2d   : > { %v655_v3 = vsel %vm643_vm4, %v650_v59, %v654_v48  ;;  %v690_v10 = vrot.slane %v688_v61, 1  ;;  %v693_v12 = vshrl.u32 %v2155_v46, 16  ;;  %v697_v14 = vrot.slane %v695_v62, 1 }
  0x2e   : > { %949 = vrot.lane.b32.xlu0 %v903_v50, %s2005_s26  ;;  %836 = vrot.lane.b32.xlu2 %v655_v3, %s2006_s27  ;;  %v480_v7 = vrot.slane %v478_v2, 7  ;;  %v686_v1 = vor.u32 %v685_v5, %v681_v57  ;;  %v700_v15 = vshll.u32 %v2171_v58, 16  ;;  %v823_v17 = vsel %vm643_vm4, %v818_v54, %v822_v55  ;;  %v1922_v54 = vld [vmem:[%s2061_s25 + $0x30] sm:$0xff] }
  0x2f   : > { %v830_v19 = vor.u32 %v829_v4, %v825_v63  ;;  %v834_v20 = vrot.slane %v832_v0, 1  ;;  %v555_v24 = vshrl.u32 %v1931_v8, 16  ;;  %v698_v28 = vor.u32 %v697_v14, %v693_v12 }
  0x30   : > { %v483_v16 = vor.u32 %v481_v6, %v480_v7  ;;  %v2192_v23 = vsel %vm2070_vm2, %v480_v7, 0  ;;  %v691_v26 = vsel %vm643_vm4, %v686_v1, %v690_v10  ;;  %v702_v31 = vrot.slane %v700_v15, 1 }
  0x31   : > { %v835_v32 = vsel %vm643_vm4, %v830_v19, %v834_v20  ;;  %v712_v36 = vshll.u32 %v2192_v23, 16  ;;  %v557_v38 = vrot.slane %v555_v24, 7  ;;  %v558_v39 = vshll.u32 %v1931_v8, 16  ;;  %v1343_v20 = vld [vmem:[%s2758_s1 + $0x20] sm:$0xf] }
  0x32   : > { %955 = vrot.lane.b32.xlu1 %v912_v45, %s2005_s26  ;;  %v2188_v22 = vsel %vm2070_vm2, 0, %v483_v16  ;;  %v527_v40 = vshrl.u32 %v1927_v25, 16  ;;  %v943_v41 = vrot.slane %v2122_v11, 1  ;;  %v944_v42 = vrot.slane %v2133_v21, 1 }
  0x33   : > { %v707_v27 = vshll.u32 %v2188_v22, 16  ;;  %v705_v33 = vshrl.u32 %v2188_v22, 16  ;;  %v703_v43 = vsel %vm643_vm4, %v698_v28, %v702_v31  ;;  %v714_v45 = vrot.slane %v712_v36, 1 }
  0x34   : > { %v485_v48 = vshrl.u32 %v1921_v37, 16  ;;  %v560_v49 = vor.u32 %v558_v39, %v557_v38  ;;  %v529_v50 = vrot.slane %v527_v40, 7  ;;  %v530_v51 = vshll.u32 %v1927_v25, 16 }
  0x35   : > { %v709_v34 = vrot.slane %v707_v27, 1  ;;  %v945_v55 = vsel %vm900_vm3, %v943_v41, %v944_v42  ;;  %v947_v56 = vrot.slane %v2165_v53, 1  ;;  %v946_v57 = vrot.slane %v2161_v52, 1 }
  0x36   : > { %864 = vrot.lane.b32.xlu0 %v823_v17, %s2006_s27  ;;  %842 = vrot.lane.b32.xlu2 %v691_v26, %s2006_s27  ;;  %v487_v59 = vrot.slane %v485_v48, 7  ;;  %v488_v60 = vshll.u32 %v1921_v37, 16  ;;  %v2216_v61 = vsel %vm2070_vm2, 0, %v560_v49  ;;  %v641_v62 = vsel %vm2070_vm2, %v557_v38, 0 }
  0x37   : > { %v710_v44 = vor.u32 %v709_v34, %v705_v33  ;;  %v532_v63 = vor.u32 %v530_v51, %v529_v50  ;;  %v492_v0 = vshrl.u32 %v1922_v54, 16  ;;  %v913_v2 = vrot.slane %v2155_v46, 1 }
  0x38   : > { %v914_v53 = vrot.slane %v2171_v58, 1  ;;  %v1053_v3 = vshll.u32 %v2216_v61, 16  ;;  %v948_v4 = vsel %vm900_vm3, %v946_v57, %v947_v56  ;;  %v1066_v5 = vrot.slane %v2216_v61, 1 }
  0x39   : > { %v715_v21 = vsel %vm643_vm4, %v710_v44, %v714_v45  ;;  %v1067_v6 = vrot.slane %v641_v62, 1  ;;  %v490_v7 = vor.u32 %v488_v60, %v487_v59  ;;  %v2228_v8 = vsel %vm2070_vm2, 0, %v532_v63  ;;  %v1923_v44 = vld [vmem:[%s2061_s25 + $0x38] sm:$0xff] }
  0x3a   : > { %866 = vrot.lane.b32.xlu1 %v835_v32, %s2006_s27  ;;  %v494_v1 = vrot.slane %v492_v0, 7  ;;  %v495_v10 = vshll.u32 %v1922_v54, 16  ;;  %v915_v12 = vsel %vm900_vm3, %v913_v2, %v914_v53  ;;  %v1051_v58 = vshrl.u32 %v2216_v61, 16 }
  0x3b   : > { %v1055_v14 = vrot.slane %v1053_v3, 1  ;;  %v1058_v15 = vshll.u32 %v641_v62, 16  ;;  %v916_v16 = vrot.slane %v2188_v22, 1  ;;  %v917_v17 = vrot.slane %v2192_v23, 1 }
  0x3c   : > { %v631_v19 = vsel %vm2070_vm2, %v487_v59, 0  ;;  %v1068_v24 = vsel %vm900_vm3, %v1066_v5, %v1067_v6  ;;  %v2243_v25 = vsel %vm2070_vm2, 0, %v490_v7  ;;  %v791_v26 = vshll.u32 %v2228_v8, 16 }
  0x3d   : > { %v1349_v27 = vunpack.c.l.b16 %v1343_v20  ;;  %v637_v23 = vsel %vm2070_vm2, %v529_v50, 0  ;;  %v497_v28 = vor.u32 %v495_v10, %v494_v1  ;;  %v1056_v31 = vor.u32 %v1055_v14, %v1051_v58 }
  0x3e   : > { %844 = vrot.lane.b32.xlu0 %v703_v43, %s2006_s27  ;;  %977 = vrot.lane.b32.xlu2 %v945_v55, %s2005_s26  ;;  %v1060_v32 = vrot.slane %v1058_v15, 1  ;;  %v719_v33 = vshll.u32 %v2243_v25, 16  ;;  %v918_v36 = vsel %vm900_vm3, %v916_v16, %v917_v17  ;;  %v919_v37 = vrot.slane %v2243_v25, 1 }
  0x3f   : > { %v1351_v34 = vpack.c.b16 %v1349_v27, %v1349_v27  ;;  %v920_v38 = vrot.slane %v631_v19, 1  ;;  %v789_v39 = vshrl.u32 %v2228_v8, 16  ;;  %v793_v40 = vrot.slane %v791_v26, 1  ;;  %v1924_v26 = vld [vmem:[%s2061_s25 + $0x40] sm:$0xff] }
  0x40   : > { %v796_v41 = vshll.u32 %v637_v23, 16  ;;  %v2259_v43 = vsel %vm2070_vm2, 0, %v497_v28  ;;  %v1061_v45 = vsel %vm643_vm4, %v1056_v31, %v1060_v32  ;;  %v717_v48 = vshrl.u32 %v2243_v25, 16 }
  0x41   : > { %v2255_v42 = vsel %vm1120_vm5, %v1351_v34, 0  ;;  %v721_v49 = vrot.slane %v719_v33, 1  ;;  %v724_v50 = vshll.u32 %v631_v19, 16  ;;  %v921_v51 = vsel %vm900_vm3, %v919_v37, %v920_v38  ;;  %v2305_v37 = vld [vmem:[%s2758_s1 + $0x18] sm:$0xff] }
  0x42   : > { %846 = vrot.lane.b32.xlu1 %v715_v21, %s2006_s27  ;;  %1364 = vmatpush.bf16.msra.mxu2 %v2255_v42  ;;  %v794_v54 = vor.u32 %v793_v40, %v789_v39  ;;  %v798_v55 = vrot.slane %v796_v41, 1  ;;  %v632_v56 = vsel %vm2070_vm2, %v494_v1, 0  ;;  %v731_v57 = vshll.u32 %v2259_v43, 16 }
  0x43   : > { %v499_v21 = vshrl.u32 %v1923_v44, 16  ;;  %v722_v59 = vor.u32 %v721_v49, %v717_v48  ;;  %v726_v60 = vrot.slane %v724_v50, 1  ;;  %v736_v62 = vshll.u32 %v632_v56, 16 }
  0x44   : > { %v923_v63 = vrot.slane %v632_v56, 1  ;;  %v799_v0 = vsel %vm643_vm4, %v794_v54, %v798_v55  ;;  %v729_v2 = vshrl.u32 %v2259_v43, 16  ;;  %v733_v53 = vrot.slane %v731_v57, 1  ;;  %v1933_v57 = vld [vmem:[%s2758_s1 + $0xc] sm:$0xff] }
  0x45   : > { %v922_v3 = vrot.slane %v2259_v43, 1  ;;  %v502_v5 = vshll.u32 %v1923_v44, 16  ;;  %v727_v6 = vsel %vm643_vm4, %v722_v59, %v726_v60  ;;  %v738_v1 = vrot.slane %v736_v62, 1  ;;  %v1049_v62 = vld [vmem:[%s2758_s1 + $0x8] sm:$0xf] }
  0x46   : > { %979 = vrot.lane.b32.xlu0 %v948_v4, %s2005_s26  ;;  %957 = vrot.lane.b32.xlu2 %v915_v12, %s2005_s26  ;;  %v501_v4 = vrot.slane %v499_v21, 7  ;;  %v734_v7 = vor.u32 %v733_v53, %v729_v2  ;;  %v937_v58 = vrot.slane %v2228_v8, 1  ;;  %v938_v14 = vrot.slane %v637_v23, 1 }
  0x47   : > { %v924_v10 = vsel %vm900_vm3, %v922_v3, %v923_v63  ;;  %v506_v23 = vshrl.u32 %v1924_v26, 16  ;;  %v509_v31 = vshll.u32 %v1924_v26, 16  ;;  %1365 = vmatpush.bf16.msra.mxu2 %v2305_v37  ;;  %v1218_v3 = vunpack.c.l.b16 %v1049_v62 }
  0x48   : > { %v504_v12 = vor.u32 %v502_v5, %v501_v4  ;;  %v739_v15 = vsel %vm643_vm4, %v734_v7, %v738_v1  ;;  %v633_v17 = vsel %vm2070_vm2, %v501_v4, 0  ;;  %v939_v19 = vsel %vm900_vm3, %v937_v58, %v938_v14 }
  0x49   : > { %v508_v28 = vrot.slane %v506_v23, 7  ;;  %v748_v60 = vshll.u32 %v633_v17, 16 }
  0x4a   : > { %1069 = vrot.lane.b32.xlu1 %v1068_v24, %s2005_s26  ;;  %v2284_v16 = vsel %vm2070_vm2, 0, %v504_v12  ;;  %v926_v24 = vrot.slane %v633_v17, 1  ;;  %v1932_v17 = vld [vmem:[%s2758_s1] sm:$0xff] }
  0x4b   : > { %v925_v20 = vrot.slane %v2284_v16, 1  ;;  %v511_v32 = vor.u32 %v509_v31, %v508_v28  ;;  %v743_v54 = vshll.u32 %v2284_v16, 16  ;;  %v741_v21 = vshrl.u32 %v2284_v16, 16 }
  0x4c   : > { %v750_v53 = vrot.slane %v748_v60, 1 }
  0x4d   : > { %v927_v27 = vsel %vm900_vm3, %v925_v20, %v926_v24  ;;  %v2297_v33 = vsel %vm2070_vm2, 0, %v511_v32  ;;  %v745_v59 = vrot.slane %v743_v54, 1 }
  0x4e   : > { %959 = vrot.lane.b32.xlu0 %v918_v36, %s2005_s26  ;;  %1062 = vrot.lane.b32.xlu2 %v1061_v45, %s2006_s27  ;;  %v755_v34 = vshll.u32 %v2297_v33, 16  ;;  %v634_v36 = vsel %vm2070_vm2, %v508_v28, 0  ;;  %v753_v38 = vshrl.u32 %v2297_v33, 16  ;;  %v1077_v45 = vld [vmem:[%s2758_s1 + $0x14] sm:$0xf]  ;;  %v928_v31 = vrot.slane %v2297_v33, 1 }
  0x4f   : > { %v760_v40 = vshll.u32 %v634_v36, 16  ;;  %v1083_v48 = vunpack.c.l.b16 %v1077_v45  ;;  %v746_v2 = vor.u32 %v745_v59, %v741_v21  ;;  %v1926_v28 = vld [vmem:[%s2061_s25 + $0x50] sm:$0xff]  ;;  %v929_v32 = vrot.slane %v634_v36, 1 }
  0x50   : > { %v757_v39 = vrot.slane %v755_v34, 1  ;;  %v520_v34 = vshrl.u32 %v1926_v28, 16 }
  0x51   : > { %v762_v44 = vrot.slane %v760_v40, 1  ;;  %v1085_v50 = vpack.c.b16 %v1083_v48, %v1083_v48  ;;  %v751_v5 = vsel %vm643_vm4, %v746_v2, %v750_v53  ;;  %v1943_v53 = vld [vmem:[%s2061_s25 + $0x78] sm:$0xff]  }
  0x52   : > { %961 = vrot.lane.b32.xlu1 %v921_v51, %s2005_s26  ;;  %v758_v41 = vor.u32 %v757_v39, %v753_v38  ;;  %v1925_v51 = vld [vmem:[%s2061_s25 + $0x48] sm:$0xff]  ;;  %v930_v39 = vsel %vm900_vm3, %v928_v31, %v929_v32  ;;  %v522_v40 = vrot.slane %v520_v34, 7  ;;  %s1915_s25 = sshll.u32 %s2770_s18, 8 }
  0x53   : > { %v1122_v55 = vsel %vm1120_vm5, %v1085_v50, 0  ;;  %v513_v56 = vshrl.u32 %v1925_v51, 16  ;;  %s2521_s28 = scalar_lea.vmem %s2762_s5, %s1915_s25 }
  0x54   : > { %v763_v49 = vsel %vm643_vm4, %v758_v41, %v762_v44  ;;  %1944 = vmatpush.bf16.msra.mxu3 %v1122_v55  ;;  %1130 = vmatpush.bf16.msra.mxu0 %v1122_v55  ;;  %v523_v41 = vshll.u32 %v1926_v28, 16 }
  0x55   : > { %v515_v63 = vrot.slane %v513_v56, 7 }
  0x56   : > { %860 = vrot.lane.b32.xlu0 %v799_v0, %s2006_s27  ;;  %848 = vrot.lane.b32.xlu2 %v727_v6, %s2006_s27  ;;  %v516_v0 = vshll.u32 %v1925_v51, 16  ;;  %v1220_v6 = vpack.c.b16 %v1218_v3, %v1218_v3  ;;  %v525_v45 = vor.u32 %v523_v41, %v522_v40  ;;  %v1941_v3 = vunpack.c.l.bf16 %v1943_v53 }
  0x57   : > { %v635_v12 = vsel %vm2070_vm2, %v515_v63, 0 }
  0x58   : > { %v518_v4 = vor.u32 %v516_v0, %v515_v63  ;;  %1945 = vmatpush.bf16.msra.mxu3 %v1933_v57  ;;  %1131 = vmatpush.bf16.msra.mxu0 %v1933_v57  ;;  %v1225_v1 = vsel %vm1120_vm5, %v1220_v6, 0  ;;  %v932_v26 = vrot.slane %v635_v12, 1  ;;  %v2349_v48 = vsel %vm2070_vm2, 0, %v525_v45 }
  0x59   : > { %1233 = vmatpush.bf16.msra.mxu1 %v1225_v1  ;;  %v934_v36 = vrot.slane %v2349_v48, 1  ;;  %v348_v6 = vmul.f32 %v1941_v3, %v2074_v13 }
  0x5a   : > { %963 = vrot.lane.b32.xlu1 %v924_v10, %s2005_s26  ;;  %v2328_v7 = vsel %vm2070_vm2, 0, %v518_v4 }
  0x5b   : > { %v767_v10 = vshll.u32 %v2328_v7, 16  ;;  %v765_v58 = vshrl.u32 %v2328_v7, 16  ;;  %v931_v24 = vrot.slane %v2328_v7, 1 }
  0x5c   : > { %1946 = vmatpush.bf16.msrb.mxu3 %v1225_v1 }
  0x5d   : > { %v769_v14 = vrot.slane %v767_v10, 1  ;;  %1234 = vmatpush.bf16.msra.mxu1 %v1932_v17  ;;  %v933_v23 = vsel %vm900_vm3, %v931_v24, %v932_v26  ;;  %v779_v10 = vshll.u32 %v2349_v48, 16 }
  0x5e   : > { %850 = vrot.lane.b32.xlu0 %v739_v15, %s2006_s27  ;;  %973 = vrot.lane.b32.xlu2 %v939_v19, %s2005_s26  ;;  %v772_v15 = vshll.u32 %v635_v12, 16  ;;  %v350_v12 = vpack.c.bf16 %v348_v6, %v348_v6 }
  0x5f   : > { %v770_v19 = vor.u32 %v769_v14, %v765_v58 }
  0x60   : > { %v774_v20 = vrot.slane %v772_v15, 1  ;;  %1947 = vmatpush.bf16.msrb.mxu3 %v1932_v17  ;;  %v781_v15 = vrot.slane %v779_v10, 1 }
  0x62   : > { %854 = vrot.lane.b32.xlu1 %v763_v49, %s2006_s27  ;;  %v636_v49 = vsel %vm2070_vm2, %v522_v40, 0 }
  0x63   : > { %v935_v50 = vrot.slane %v636_v49, 1  ;;  %v784_v17 = vshll.u32 %v636_v49, 16 }
  0x65   : > { %v936_v55 = vsel %vm900_vm3, %v934_v36, %v935_v50  ;;  %v786_v24 = vrot.slane %v784_v17, 1 }
  0x66   : > { %965 = vrot.lane.b32.xlu0 %v927_v27, %s2005_s26  ;;  %852 = vrot.lane.b32.xlu2 %v751_v5, %s2006_s27  ;;  %v775_v27 = vsel %vm643_vm4, %v770_v19, %v774_v20  ;;  %v422_v19 = vunpack.c.l.b16 %v350_v12 }
  0x6a   : > { %969 = vrot.lane.b32.xlu1 %v933_v23, %s2005_s26 }
  0x6e   : > { %856 = vrot.lane.b32.xlu0 %v775_v27, %s2006_s27  ;;  %967 = vrot.lane.b32.xlu2 %v930_v39, %s2005_s26 }
  0x76   : > { %971 = vrot.lane.b32.xlu0 %v936_v55, %s2005_s26 }
  0x7f   : > { %v839_v38 = vpop.permute.xlu2 %838 }
  0x88   : > { %v837_v57 = vpop.permute.xlu2 %836 }
  0x89   : > { %v983_v4 = vsel %vm981_vm6, %v2143_v35, %v837_v57  ;;  %v777_v35 = vshrl.u32 %v2349_v48, 16 }
  0x8b   : > { %v782_v20 = vor.u32 %v781_v15, %v777_v35 }
  0x8c   : > { %v954_v44 = vpop.permute.xlu1 %953 }
  0x8d   : > { %v787_v23 = vsel %vm643_vm4, %v782_v20, %v786_v24 }
  0x8e   : > { %858 = vrot.lane.b32.xlu2 %v787_v23, %s2006_s27 }
  0x90   : > { %v841_v51 = vpop.permute.xlu0 %840  ;;  %v843_v2 = vpop.permute.xlu2 %842 }
  0x91   : > { %v987_v54 = vsel %vm981_vm6, %v2086_v29, %v841_v51  ;;  %v985_v29 = vsel %vm981_vm6, %v2105_v47, %v839_v38 }
  0x92   : > { %v2358_v56 = vsel %vm1014_vm7, %v987_v54, %v954_v44 }
  0x93   : > { %1896 = vmatmul.msk.bf16.vlgmr.msra.gmra.mxu2 %vm1087_vm8, %v2358_v56 }
  0x94   : > { %v976_v21 = vpop.permute.xlu1 %975 }
  0x98   : > { %v863_v59 = vpop.permute.xlu0 %862 }
  0x99   : > { %v1009_v60 = vsel %vm981_vm6, %v2090_v30, %v863_v59  ;;  %v1942_v30 = vunpack.c.h.bf16 %v1943_v53 }
  0x9a   : > { %v2366_v62 = vsel %vm1014_vm7, %v1009_v60, %v976_v21 }
  0x9b   : > { %1868 = vmatmul.msk.bf16.vlgmr.msra.gmra.mxu3 %vm1087_vm8, %v2366_v62  ;;  %v349_v1 = vmul.f32 %v1942_v30, %v2074_v13 }
  0x9c   : > { %v952_v63 = vpop.permute.xlu1 %951  ;;  %1948 = vmatpush.bf16.msra.mxu3 %v2255_v42  ;;  %v989_v42 = vsel %vm981_vm6, %v2129_v18, %v843_v2  ;;  %v978_v18 = vpop.permute.xlu2 %977 }
  0x9d   : > { %v1018_v0 = vsel %vm1014_vm7, %v985_v29, %v952_v63  ;;  %v351_v58 = vpack.c.bf16 %v349_v1, %v349_v1 }
  0x9e   : > { %1856 = vmatmul.msk.bf16.vlgmr.msra.gmra.mxu0 %vm1087_vm8, %v1018_v0 }
  0xa0   : > { %v950_v5 = vpop.permute.xlu0 %949  ;;  %1949 = vmatpush.bf16.msra.mxu3 %v2305_v37  ;;  %v423_v37 = vunpack.c.l.b16 %v351_v58 }
  0xa1   : > { %v1016_v47 = vsel %vm1014_vm7, %v983_v4, %v950_v5 }
  0xa2   : > { %1876 = vmatmul.msk.bf16.vlgmr.msra.gmra.mxu1 %vm1087_vm8, %v1016_v47  ;;  %v441_v26 = vpack.c.b16 %v423_v37, %v422_v19 }
  0xa4   : > { %v956_v14 = vpop.permute.xlu1 %955  ;;  %v562_v31 = vshrl.u32 %v441_v26, 16  ;;  %v565_v34 = vshll.u32 %v441_v26, 16  ;;  %v958_v41 = vpop.permute.xlu2 %957 }
  0xa5   : > { %v1022_v13 = vsel %vm1014_vm7, %v989_v42, %v956_v14 }
  0xa6   : > { %1897 = vmatmul.msk.bf16.gmra.mxu2 %vm1087_vm8, %v1022_v13  ;;  %v564_v38 = vrot.slane %v562_v31, 7 }
  0xa8   : > { %v865_v27 = vpop.permute.xlu0 %864  ;;  %v567_v39 = vor.u32 %v565_v34, %v564_v38  ;;  %v642_v44 = vsel %vm2070_vm2, %v564_v38, 0  ;;  %v2493_v34 = vld [vmem:[%s2759_s2] ss:$0 sm:$0xff] }
  0xa9   : > { %v1011_v28 = vsel %vm981_vm6, %v2122_v11, %v865_v27  ;;  %v1324_v51 = vshll.u32 %v642_v44, 16  ;;  %v1333_v5 = vrot.slane %v642_v44, 1 }
  0xaa   : > { %v2394_v32 = vsel %vm1014_vm7, %v1011_v28, %v978_v18  ;;  %v2402_v40 = vsel %vm2070_vm2, 0, %v567_v39 }
  0xab   : > { %1869 = vmatmul.msk.bf16.gmra.mxu3 %vm1087_vm8, %v2394_v32  ;;  %v1319_v45 = vshll.u32 %v2402_v40, 16  ;;  %v1317_v50 = vshrl.u32 %v2402_v40, 16  ;;  %v1326_v57 = vrot.slane %v1324_v51, 1  ;;  %v1332_v4 = vrot.slane %v2402_v40, 1 }
  0xac   : > { %v867_v36 = vpop.permute.xlu1 %866  ;;  %v1063_v2 = vpop.permute.xlu2 %1062 }
  0xad   : > { %v1321_v54 = vrot.slane %v1319_v45, 1  ;;  %v1013_v9 = vsel %vm981_vm6, %v2161_v52, %v867_v36  ;;  %v1072_v53 = vsel %vm981_vm6, %v2216_v61, %v1063_v2 }
  0xae   : > { %1857 = vmatmul.msk.bf16.gmra.mxu0 %vm1087_vm8, %v2358_v56 }
  0xaf   : > { %v1322_v21 = vor.u32 %v1321_v54, %v1317_v50 }
  0xb0   : > { %v845_v11 = vpop.permute.xlu0 %844 }
  0xb1   : > { %v991_v49 = vsel %vm981_vm6, %v2155_v46, %v845_v11  ;;  %v1327_v59 = vsel %vm643_vm4, %v1322_v21, %v1326_v57 }
  0xb2   : > { %1877 = vmatmul.msk.bf16.gmra.mxu1 %vm1087_vm8, %v1018_v0  ;;  %v1024_v55 = vsel %vm1014_vm7, %v991_v49, %v958_v41  ;;  %1328 = vrot.lane.b32.xlu1 %v1327_v59, %s2006_s27 }
  0xb4   : > { %v847_v29 = vpop.permute.xlu1 %846 }
  0xb5   : > { %v993_v63 = vsel %vm981_vm6, %v2188_v22, %v847_v29  ;;  %v849_v22 = vpop.permute.xlu2 %848 }
  0xb6   : > { %1898 = vmatmul.msk.bf16.gmra.mxu2 %vm1087_vm8, %v1024_v55  ;;  %v995_v61 = vsel %vm981_vm6, %v2243_v25, %v849_v22 }
  0xb8   : > { %v980_v46 = vpop.permute.xlu0 %979 }
  0xb9   : > { %v2418_v60 = vsel %vm1014_vm7, %v1013_v9, %v980_v46 }
  0xbb   : > { %1870 = vmatmul.msk.bf16.gmra.mxu3 %vm1087_vm8, %v2418_v60 }
  0xbc   : > { %v1070_v3 = vpop.permute.xlu1 %1069 }
  0xbd   : > { %v2432_v30 = vsel %vm1014_vm7, %v1072_v53, %v1070_v3  ;;  %v974_v10 = vpop.permute.xlu2 %973 }
  0xbe   : > { %1858 = vmatmul.msk.bf16.gmra.mxu0 %vm1087_vm8, %v1022_v13 }
  0xc0   : > { %v960_v0 = vpop.permute.xlu0 %959 }
  0xc1   : > { %v1026_v52 = vsel %vm1014_vm7, %v993_v63, %v960_v0 }
  0xc2   : > { %1878 = vmatmul.msk.bf16.gmra.mxu1 %vm1087_vm8, %v2358_v56  ;;  %v1334_v56 = vsel %vm900_vm3, %v1332_v4, %v1333_v5 }
  0xc3   : > { %1335 = vrot.lane.b32.xlu2 %v1334_v56, %s2005_s26 }
  0xc4   : > { %v962_v6 = vpop.permute.xlu1 %961 }
  0xc5   : > { %v1028_v47 = vsel %vm1014_vm7, %v995_v61, %v962_v6  ;;  %v853_v35 = vpop.permute.xlu2 %852 }
  0xc6   : > { %1899 = vmatmul.msk.bf16.gmra.mxu2 %vm1087_vm8, %v1026_v52  ;;  %v999_v15 = vsel %vm981_vm6, %v2284_v16, %v853_v35 }
  0xc8   : > { %v861_v1 = vpop.permute.xlu0 %860 }
  0xc9   : > { %v1007_v42 = vsel %vm981_vm6, %v2228_v8, %v861_v1 }
  0xca   : > { %v2448_v12 = vsel %vm1014_vm7, %v1007_v42, %v974_v10 }
  0xcb   : > { %1871 = vmatmul.msk.bf16.gmra.mxu3 %vm1087_vm8, %v2432_v30 }
  0xcc   : > { %v964_v14 = vpop.permute.xlu1 %963 }
  0xcd   : > { %v968_v37 = vpop.permute.xlu2 %967 }
  0xce   : > { %1859 = vmatmul.msk.bf16.gmra.mxu0 %vm1087_vm8, %v1024_v55 }
  0xd0   : > { %v851_v58 = vpop.permute.xlu0 %850 }
  0xd1   : > { %v997_v25 = vsel %vm981_vm6, %v2259_v43, %v851_v58 }
  0xd2   : > { %1879 = vmatmul.msk.bf16.gmra.mxu1 %vm1087_vm8, %v1022_v13  ;;  %v1030_v8 = vsel %vm1014_vm7, %v997_v25, %v964_v14 }
  0xd4   : > { %v855_v19 = vpop.permute.xlu1 %854 }
  0xd5   : > { %v1001_v13 = vsel %vm981_vm6, %v2297_v33, %v855_v19 }
  0xd6   : > { %1900 = vmatmul.msk.bf16.gmra.mxu2 %vm1087_vm8, %v1028_v47  ;;  %v1034_v16 = vsel %vm1014_vm7, %v1001_v13, %v968_v37 }
  0xd8   : > { %v966_v17 = vpop.permute.xlu0 %965 }
  0xd9   : > { %v1032_v43 = vsel %vm1014_vm7, %v999_v15, %v966_v17 }
  0xdb   : > { %1888 = vmatmul.msk.bf16.vlgmr.msrb.gmra.mxu3 %vm1087_vm8, %v2448_v12 }
  0xdc   : > { %v970_v18 = vpop.permute.xlu1 %969 }
  0xde   : > { %1860 = vmatmul.msk.bf16.gmra.mxu0 %vm1087_vm8, %v1026_v52 }
  0xe0   : > { %v857_v20 = vpop.permute.xlu0 %856 }
  0xe1   : > { %v1003_v24 = vsel %vm981_vm6, %v2328_v7, %v857_v20 }
  0xe2   : > { %1880 = vmatmul.msk.bf16.gmra.mxu1 %vm1087_vm8, %v1024_v55  ;;  %v2481_v33 = vsel %vm1014_vm7, %v1003_v24, %v970_v18 }
  0xe6   : > { %1901 = vmatmul.msk.bf16.gmra.mxu2 %vm1087_vm8, %v1030_v8 }
  0xe8   : > { %v859_v23 = vpop.permute.xlu2 %858  ;;  %v972_v39 = vpop.permute.xlu0 %971 }
  0xe9   : > { %v1005_v38 = vsel %vm981_vm6, %v2349_v48, %v859_v23  ;;  %v2510_v48 = vld [vmem:[%s2761_s4] ss:$0 sm:$0xff] }
  0xea   : > { %v2504_v45 = vsel %vm1014_vm7, %v1005_v38, %v972_v39 }
  0xeb   : > { %1889 = vmatmul.msk.bf16.gmra.mxu3 %vm1087_vm8, %v2366_v62 }
  0xee   : > { %1861 = vmatmul.msk.bf16.gmra.mxu0 %vm1087_vm8, %v1028_v47 }
  0xf2   : > { %1881 = vmatmul.msk.bf16.gmra.mxu1 %vm1087_vm8, %v1026_v52 }
  0xf6   : > { %1902 = vmatmul.msk.bf16.gmra.mxu2 %vm1087_vm8, %v1032_v43 }
  0xfb   : > { %1890 = vmatmul.msk.bf16.gmra.mxu3 %vm1087_vm8, %v2394_v32 }
  0xfe   : > { %1862 = vmatmul.msk.bf16.gmra.mxu0 %vm1087_vm8, %v1030_v8 }
 0x102   : > { %1882 = vmatmul.msk.bf16.gmra.mxu1 %vm1087_vm8, %v1028_v47 }
 0x106   : > { %1903 = vmatmul.msk.bf16.gmra.mxu2 %vm1087_vm8, %v1034_v16 }
 0x10b   : > { %1891 = vmatmul.msk.bf16.gmra.mxu3 %vm1087_vm8, %v2418_v60 }
 0x10e   : > { %1863 = vmatmul.msk.bf16.gmra.mxu0 %vm1087_vm8, %v1032_v43 }
 0x112   : > { %1883 = vmatmul.msk.bf16.gmra.mxu1 %vm1087_vm8, %v1030_v8 }
 0x116   : > { %1904 = vmatmul.msk.bf16.gmra.mxu2 %vm1087_vm8, %v2481_v33  ;;  %v1367_v26 = vpop.f32.mrf.mxu2 }
 0x11b   : > { %v1133_v27 = vpop.f32.mrf.mxu0  ;;  %1908 = vmatmul.msk.bf16.vlgmr.msra.gmra.mxu3 %vm1087_vm8, %v2394_v32  ;;  %v2500_v32 = vld [vmem:[%s2760_s3] ss:$0 sm:$0xff] }
 0x11d   : > { %v1336_v24 = vpop.permute.xlu2 %1335 }
 0x11e   : > { %1864 = vmatmul.msk.bf16.gmra.mxu0 %vm1087_vm8, %v1034_v16  ;;  %v2488_v28 = vpop.f32.mrf.mxu3  ;;  %v1369_v11 = vpop.f32.mrf.mxu2 }
 0x11f   : > { %v1236_v7 = vpop.f32.mrf.mxu1 }
 0x120   : > { %v1237_v31 = vadd.f32 %v1236_v7, %v1133_v27 }
 0x122   : > { %v1447_v41 = vadd.f32 %v1367_v26, %v1237_v31  ;;  %1884 = vmatmul.msk.bf16.gmra.mxu1 %vm1087_vm8, %v1032_v43 }
 0x123   : > { %v1135_v44 = vpop.f32.mrf.mxu0 }
 0x124   : > { %v1483_v49 = vmul.f32 %v2493_v34, %v1447_v41 }
 0x126   : > { %v1519_v36 = vadd.f32 %v2500_v32, %v1483_v49  ;;  %v2514_v50 = vpop.f32.mrf.mxu3  ;;  %1905 = vmatmul.msk.bf16.gmra.mxu2 %vm1087_vm8, %v2504_v45 }
 0x127   : > { %v1238_v51 = vpop.f32.mrf.mxu1 }
 0x128   : > { %vm1551_vm9 = vcmp.ge.f32.partialorder %v1519_v36, 0.0  ;;  %v1587_v54 = vmul.f32 %v2510_v48, %v1519_v36  ;;  %v1239_v55 = vadd.f32 %v1238_v51, %v1135_v44 }
 0x129   : > { %v1372_v57 = vpop.f32.mrf.mxu2 }
 0x12a   : > { %v1619_v21 = vsel %vm1551_vm9, %v1519_v36, %v1587_v54  ;;  %v1448_v9 = vadd.f32 %v1369_v11, %v1239_v55 }
 0x12b   : > { %1652 = vst.msk [vmem:[%s2521_s28] sm:$0xff] %vm1651_vm10, %v1619_v21  ;;  %v1138_v59 = vpop.f32.mrf.mxu0  ;;  %1909 = vmatmul.msk.bf16.gmra.mxu3 %vm1087_vm8, %v2418_v60 }
 0x12c   : > { %v1484_v46 = vmul.f32 %v2493_v34, %v1448_v9 }
 0x12e   : > { %v1520_v29 = vadd.f32 %v2500_v32, %v1484_v46  ;;  %1865 = vmatmul.msk.bf16.gmra.mxu0 %vm1087_vm8, %v2481_v33  ;;  %v2532_v63 = vpop.f32.mrf.mxu3 }
 0x12f   : > { %v1241_v0 = vpop.f32.mrf.mxu1 }
 0x130   : > { %vm1552_vm11 = vcmp.ge.f32.partialorder %v1520_v29, 0.0  ;;  %v1588_v2 = vmul.f32 %v2510_v48, %v1520_v29  ;;  %v1242_v52 = vadd.f32 %v1241_v0, %v1138_v59 }
 0x131   : > { %v1374_v53 = vpop.f32.mrf.mxu2 }
 0x132   : > { %v1620_v3 = vsel %vm1552_vm11, %v1520_v29, %v1588_v2  ;;  %v1449_v22 = vadd.f32 %v1372_v57, %v1242_v52  ;;  %1885 = vmatmul.msk.bf16.gmra.mxu1 %vm1087_vm8, %v1034_v16 }
 0x133   : > { %1653 = vst.msk [vmem:[%s2521_s28 + $0x8] sm:$0xff] %vm1651_vm10, %v1620_v3  ;;  %v1140_v60 = vpop.f32.mrf.mxu0 }
 0x134   : > { %v1485_v4 = vmul.f32 %v2493_v34, %v1449_v22 }
 0x136   : > { %v1521_v5 = vadd.f32 %v2500_v32, %v1485_v4  ;;  %v2540_v56 = vpop.f32.mrf.mxu3  ;;  %1906 = vmatmul.msk.bf16.gmra.mxu2 %vm1087_vm8, %v2448_v12 }
 0x137   : > { %v1243_v61 = vpop.f32.mrf.mxu1 }
 0x138   : > { %vm1553_vm12 = vcmp.ge.f32.partialorder %v1521_v5, 0.0  ;;  %v1589_v6 = vmul.f32 %v2510_v48, %v1521_v5  ;;  %v1244_v1 = vadd.f32 %v1243_v61, %v1140_v60 }
 0x139   : > { %v1377_v47 = vpop.f32.mrf.mxu2 }
 0x13a   : > { %v1621_v42 = vsel %vm1553_vm12, %v1521_v5, %v1589_v6  ;;  %v1450_v10 = vadd.f32 %v1374_v53, %v1244_v1 }
 0x13b   : > { %1654 = vst.msk [vmem:[%s2521_s28 + $0x10] sm:$0xff] %vm1651_vm10, %v1621_v42  ;;  %v1143_v58 = vpop.f32.mrf.mxu0  ;;  %1910 = vmatmul.msk.bf16.gmra.mxu3 %vm1087_vm8, %v2432_v30  ;;  %v1329_v30 = vpop.permute.xlu1 %1328 }
 0x13c   : > { %v1486_v25 = vmul.f32 %v2493_v34, %v1450_v10  ;;  %v1338_v20 = vsel %vm981_vm6, %v2402_v40, %v1329_v30 }
 0x13d   : > { %v1340_v7 = vsel %vm1014_vm7, %v1338_v20, %v1336_v24 }
 0x13e   : > { %v1522_v14 = vadd.f32 %v2500_v32, %v1486_v25  ;;  %1866 = vmatmul.msk.bf16.gmra.mxu0 %vm1087_vm8, %v2504_v45  ;;  %v2553_v8 = vpop.f32.mrf.mxu3 }
 0x13f   : > { %v1246_v35 = vpop.f32.mrf.mxu1 }
 0x140   : > { %vm1554_vm13 = vcmp.ge.f32.partialorder %v1522_v14, 0.0  ;;  %v1590_v15 = vmul.f32 %v2510_v48, %v1522_v14  ;;  %v1247_v17 = vadd.f32 %v1246_v35, %v1143_v58 }
 0x141   : > { %v1379_v43 = vpop.f32.mrf.mxu2 }
 0x142   : > { %v1622_v19 = vsel %vm1554_vm13, %v1522_v14, %v1590_v15  ;;  %v1451_v13 = vadd.f32 %v1377_v47, %v1247_v17  ;;  %1886 = vmatmul.msk.bf16.gmra.mxu1 %vm1087_vm8, %v2481_v33 }
 0x143   : > { %1655 = vst.msk [vmem:[%s2521_s28 + $0x18] sm:$0xff] %vm1651_vm10, %v1622_v19  ;;  %v1145_v37 = vpop.f32.mrf.mxu0 }
 0x144   : > { %v1487_v16 = vmul.f32 %v2493_v34, %v1451_v13 }
 0x146   : > { %v1523_v18 = vadd.f32 %v2500_v32, %v1487_v16  ;;  %v2564_v26 = vpop.f32.mrf.mxu3  ;;  %1907 = vmatmul.msk.bf16.gmra.mxu2 %vm1087_vm8, %v2366_v62 }
 0x147   : > { %v1248_v27 = vpop.f32.mrf.mxu1 }
 0x148   : > { %vm1555_vm14 = vcmp.ge.f32.partialorder %v1523_v18, 0.0  ;;  %v1591_v33 = vmul.f32 %v2510_v48, %v1523_v18  ;;  %v1249_v23 = vadd.f32 %v1248_v27, %v1145_v37 }
 0x149   : > { %v1382_v31 = vpop.f32.mrf.mxu2 }
 0x14a   : > { %v1623_v38 = vsel %vm1555_vm14, %v1523_v18, %v1591_v33  ;;  %v1452_v39 = vadd.f32 %v1379_v43, %v1249_v23 }
 0x14b   : > { %1656 = vst.msk [vmem:[%s2521_s28 + $0x20] sm:$0xff] %vm1651_vm10, %v1623_v38  ;;  %v1148_v40 = vpop.f32.mrf.mxu0  ;;  %1911 = vmatmul.msk.bf16.gmra.mxu3 %vm1087_vm8, %v1340_v7 }
 0x14c   : > { %v1488_v11 = vmul.f32 %v2493_v34, %v1452_v39 }
 0x14e   : > { %v1524_v62 = vadd.f32 %v2500_v32, %v1488_v11  ;;  %1867 = vmatmul.msk.bf16.gmra.mxu0 %vm1087_vm8, %v2448_v12  ;;  %v2577_v41 = vpop.f32.mrf.mxu3 }
 0x14f   : > { %v1251_v44 = vpop.f32.mrf.mxu1 }
 0x150   : > { %vm1556_vm15 = vcmp.ge.f32.partialorder %v1524_v62, 0.0  ;;  %v1592_v49 = vmul.f32 %v2510_v48, %v1524_v62  ;;  %v1252_v36 = vadd.f32 %v1251_v44, %v1148_v40 }
 0x151   : > { %v1384_v51 = vpop.f32.mrf.mxu2 }
 0x152   : > { %v1624_v54 = vsel %vm1556_vm15, %v1524_v62, %v1592_v49  ;;  %v1453_v55 = vadd.f32 %v1382_v31, %v1252_v36  ;;  %1887 = vmatmul.msk.bf16.gmra.mxu1 %vm1087_vm8, %v2504_v45 }
 0x153   : > { %1657 = vst.msk [vmem:[%s2521_s28 + $0x28] sm:$0xff] %vm1651_vm10, %v1624_v54  ;;  %v1150_v57 = vpop.f32.mrf.mxu0 }
 0x154   : > { %v1489_v21 = vmul.f32 %v2493_v34, %v1453_v55 }
 0x156   : > { %v1525_v12 = vadd.f32 %v2500_v32, %v1489_v21  ;;  %v2586_v9 = vpop.f32.mrf.mxu3 }
 0x157   : > { %v1253_v59 = vpop.f32.mrf.mxu1 }
 0x158   : > { %vm1557_vm0 = vcmp.ge.f32.partialorder %v1525_v12, 0.0  ;;  %v1593_v46 = vmul.f32 %v2510_v48, %v1525_v12  ;;  %v1254_v29 = vadd.f32 %v1253_v59, %v1150_v57 }
 0x159   : > { %v1387_v0 = vpop.f32.mrf.mxu2 }
 0x15a   : > { %v1625_v2 = vsel %vm1557_vm0, %v1525_v12, %v1593_v46  ;;  %v1454_v52 = vadd.f32 %v1384_v51, %v1254_v29 }
 0x15b   : > { %1658 = vst.msk [vmem:[%s2521_s28 + $0x30] sm:$0xff] %vm1651_vm10, %v1625_v2  ;;  %v1153_v45 = vpop.f32.mrf.mxu0 }
 0x15c   : > { %v1490_v53 = vmul.f32 %v2493_v34, %v1454_v52 }
 0x15e   : > { %v1526_v3 = vadd.f32 %v2500_v32, %v1490_v53  ;;  %v2593_v22 = vpop.f32.mrf.mxu3 }
 0x15f   : > { %v1256_v60 = vpop.f32.mrf.mxu1 }
 0x160   : > { %vm1558_vm1 = vcmp.ge.f32.partialorder %v1526_v3, 0.0  ;;  %v1594_v4 = vmul.f32 %v2510_v48, %v1526_v3  ;;  %v1257_v5 = vadd.f32 %v1256_v60, %v1153_v45 }
 0x161   : > { %v1389_v61 = vpop.f32.mrf.mxu2 }
 0x162   : > { %v1626_v6 = vsel %vm1558_vm1, %v1526_v3, %v1594_v4  ;;  %v1455_v1 = vadd.f32 %v1387_v0, %v1257_v5 }
 0x163   : > { %1659 = vst.msk [vmem:[%s2521_s28 + $0x38] sm:$0xff] %vm1651_vm10, %v1626_v6  ;;  %v1155_v47 = vpop.f32.mrf.mxu0 }
 0x164   : > { %v1491_v42 = vmul.f32 %v2493_v34, %v1455_v1 }
 0x166   : > { %v1527_v10 = vadd.f32 %v2500_v32, %v1491_v42  ;;  %v2600_v58 = vpop.f32.mrf.mxu3 }
 0x167   : > { %v1258_v25 = vpop.f32.mrf.mxu1 }
 0x168   : > { %vm1559_vm2 = vcmp.ge.f32.partialorder %v1527_v10, 0.0  ;;  %v1595_v14 = vmul.f32 %v2510_v48, %v1527_v10  ;;  %v1259_v35 = vadd.f32 %v1258_v25, %v1155_v47 }
 0x169   : > { %v1392_v15 = vpop.f32.mrf.mxu2 }
 0x16a   : > { %v1627_v17 = vsel %vm1559_vm2, %v1527_v10, %v1595_v14  ;;  %v1456_v43 = vadd.f32 %v1389_v61, %v1259_v35 }
 0x16b   : > { %1660 = vst.msk [vmem:[%s2521_s28 + $0x40] sm:$0xff] %vm1651_vm10, %v1627_v17  ;;  %v1158_v19 = vpop.f32.mrf.mxu0 }
 0x16c   : > { %v1492_v13 = vmul.f32 %v2493_v34, %v1456_v43 }
 0x16e   : > { %v1528_v30 = vadd.f32 %v2500_v32, %v1492_v13  ;;  %v2607_v37 = vpop.f32.mrf.mxu3 }
 0x16f   : > { %v1261_v16 = vpop.f32.mrf.mxu1 }
 0x170   : > { %vm1560_vm3 = vcmp.ge.f32.partialorder %v1528_v30, 0.0  ;;  %v1596_v20 = vmul.f32 %v2510_v48, %v1528_v30  ;;  %v1262_v24 = vadd.f32 %v1261_v16, %v1158_v19 }
 0x171   : > { %v1394_v18 = vpop.f32.mrf.mxu2 }
 0x172   : > { %v1628_v27 = vsel %vm1560_vm3, %v1528_v30, %v1596_v20  ;;  %v1457_v33 = vadd.f32 %v1392_v15, %v1262_v24 }
 0x173   : > { %1661 = vst.msk [vmem:[%s2521_s28 + $0x48] sm:$0xff] %vm1651_vm10, %v1628_v27  ;;  %v1160_v23 = vpop.f32.mrf.mxu0 }
 0x174   : > { %v1493_v7 = vmul.f32 %v2493_v34, %v1457_v33 }
 0x176   : > { %v1529_v31 = vadd.f32 %v2500_v32, %v1493_v7  ;;  %v2614_v38 = vpop.f32.mrf.mxu3 }
 0x177   : > { %v1263_v39 = vpop.f32.mrf.mxu1 }
 0x178   : > { %vm1561_vm4 = vcmp.ge.f32.partialorder %v1529_v31, 0.0  ;;  %v1597_v40 = vmul.f32 %v2510_v48, %v1529_v31  ;;  %v1264_v11 = vadd.f32 %v1263_v39, %v1160_v23 }
 0x179   : > { %v1397_v62 = vpop.f32.mrf.mxu2 }
 0x17a   : > { %v1629_v44 = vsel %vm1561_vm4, %v1529_v31, %v1597_v40  ;;  %v1458_v49 = vadd.f32 %v1394_v18, %v1264_v11  ;;  %v1297_v31 = vadd.f32 %v2593_v22, %v2488_v28 }
 0x17b   : > { %1662 = vst.msk [vmem:[%s2521_s28 + $0x50] sm:$0xff] %vm1651_vm10, %v1629_v44  ;;  %v1163_v36 = vpop.f32.mrf.mxu0 }
 0x17c   : > { %v1494_v51 = vmul.f32 %v2493_v34, %v1458_v49 }
 0x17e   : > { %v1530_v54 = vadd.f32 %v2500_v32, %v1494_v51  ;;  %v2621_v55 = vpop.f32.mrf.mxu3 }
 0x17f   : > { %v1266_v57 = vpop.f32.mrf.mxu1 }
 0x180   : > { %vm1562_vm5 = vcmp.ge.f32.partialorder %v1530_v54, 0.0  ;;  %v1598_v21 = vmul.f32 %v2510_v48, %v1530_v54  ;;  %v1267_v12 = vadd.f32 %v1266_v57, %v1163_v36 }
 0x181   : > { %v1399_v59 = vpop.f32.mrf.mxu2 }
 0x182   : > { %v1630_v46 = vsel %vm1562_vm5, %v1530_v54, %v1598_v21  ;;  %v1459_v29 = vadd.f32 %v1397_v62, %v1267_v12  ;;  %v1299_v12 = vadd.f32 %v2600_v58, %v2514_v50 }
 0x183   : > { %1663 = vst.msk [vmem:[%s2521_s28 + $0x58] sm:$0xff] %vm1651_vm10, %v1630_v46  ;;  %v1165_v0 = vpop.f32.mrf.mxu0 }
 0x184   : > { %v1495_v2 = vmul.f32 %v2493_v34, %v1459_v29 }
 0x186   : > { %v1531_v52 = vadd.f32 %v2500_v32, %v1495_v2  ;;  %v2628_v45 = vpop.f32.mrf.mxu3 }
 0x187   : > { %v1268_v53 = vpop.f32.mrf.mxu1 }
 0x188   : > { %vm1563_vm6 = vcmp.ge.f32.partialorder %v1531_v52, 0.0  ;;  %v1599_v3 = vmul.f32 %v2510_v48, %v1531_v52  ;;  %v1269_v60 = vadd.f32 %v1268_v53, %v1165_v0 }
 0x189   : > { %v1402_v4 = vpop.f32.mrf.mxu2 }
 0x18a   : > { %v1631_v5 = vsel %vm1563_vm6, %v1531_v52, %v1599_v3  ;;  %v1460_v61 = vadd.f32 %v1399_v59, %v1269_v60 }
 0x18b   : > { %1664 = vst.msk [vmem:[%s2521_s28 + $0x60] sm:$0xff] %vm1651_vm10, %v1631_v5  ;;  %v1168_v6 = vpop.f32.mrf.mxu0 }
 0x18c   : > { %v1496_v1 = vmul.f32 %v2493_v34, %v1460_v61 }
 0x18e   : > { %v1532_v47 = vadd.f32 %v2500_v32, %v1496_v1  ;;  %v2635_v42 = vpop.f32.mrf.mxu3  ;;  %v1302_v1 = vadd.f32 %v2607_v37, %v2532_v63 }
 0x18f   : > { %v1271_v10 = vpop.f32.mrf.mxu1 }
 0x190   : > { %vm1564_vm7 = vcmp.ge.f32.partialorder %v1532_v47, 0.0  ;;  %v1600_v25 = vmul.f32 %v2510_v48, %v1532_v47  ;;  %v1272_v14 = vadd.f32 %v1271_v10, %v1168_v6 }
 0x191   : > { %v1404_v35 = vpop.f32.mrf.mxu2 }
 0x192   : > { %v1632_v15 = vsel %vm1564_vm7, %v1532_v47, %v1600_v25  ;;  %v1461_v17 = vadd.f32 %v1402_v4, %v1272_v14 }
 0x193   : > { %1665 = vst.msk [vmem:[%s2521_s28 + $0x68] sm:$0xff] %vm1651_vm10, %v1632_v15  ;;  %v1170_v43 = vpop.f32.mrf.mxu0 }
 0x194   : > { %v1497_v19 = vmul.f32 %v2493_v34, %v1461_v17 }
 0x196   : > { %v1533_v13 = vadd.f32 %v2500_v32, %v1497_v19  ;;  %v2642_v30 = vpop.f32.mrf.mxu3 }
 0x197   : > { %v1273_v16 = vpop.f32.mrf.mxu1 }
 0x198   : > { %vm1565_vm8 = vcmp.ge.f32.partialorder %v1533_v13, 0.0  ;;  %v1601_v20 = vmul.f32 %v2510_v48, %v1533_v13  ;;  %v1274_v24 = vadd.f32 %v1273_v16, %v1170_v43 }
 0x199   : > { %v1407_v18 = vpop.f32.mrf.mxu2 }
 0x19a   : > { %v1633_v27 = vsel %vm1565_vm8, %v1533_v13, %v1601_v20  ;;  %v1462_v33 = vadd.f32 %v1404_v35, %v1274_v24 }
 0x19b   : > { %1666 = vst.msk [vmem:[%s2521_s28 + $0x70] sm:$0xff] %vm1651_vm10, %v1633_v27  ;;  %v1173_v23 = vpop.f32.mrf.mxu0 }
 0x19c   : > { %v1498_v7 = vmul.f32 %v2493_v34, %v1462_v33 }
 0x19e   : > { %v1534_v39 = vadd.f32 %v2500_v32, %v1498_v7  ;;  %v1427_v40 = vpop.f32.mrf.mxu3 }
 0x19f   : > { %v1471_v11 = vadd.f32 %v1427_v40, %v1297_v31  ;;  %v1276_v62 = vpop.f32.mrf.mxu1 }
 0x1a0   : > { %vm1566_vm9 = vcmp.ge.f32.partialorder %v1534_v39, 0.0  ;;  %v1602_v44 = vmul.f32 %v2510_v48, %v1534_v39  ;;  %v1277_v49 = vadd.f32 %v1276_v62, %v1173_v23 }
 0x1a1   : > { %v1507_v36 = vmul.f32 %v2493_v34, %v1471_v11  ;;  %v1409_v51 = vpop.f32.mrf.mxu2 }
 0x1a2   : > { %v1634_v54 = vsel %vm1566_vm9, %v1534_v39, %v1602_v44  ;;  %v1463_v57 = vadd.f32 %v1407_v18, %v1277_v49  ;;  %v1304_v18 = vadd.f32 %v2614_v38, %v2540_v56 }
 0x1a3   : > { %1667 = vst.msk [vmem:[%s2521_s28 + $0x78] sm:$0xff] %vm1651_vm10, %v1634_v54  ;;  %v1543_v21 = vadd.f32 %v2500_v32, %v1507_v36  ;;  %v1175_v28 = vpop.f32.mrf.mxu0  ;;  %v1307_v54 = vadd.f32 %v2621_v55, %v2553_v8 }
 0x1a4   : > { %v1499_v22 = vmul.f32 %v2493_v34, %v1463_v57 }
 0x1a5   : > { %vm1575_vm11 = vcmp.ge.f32.partialorder %v1543_v21, 0.0  ;;  %v1611_v59 = vmul.f32 %v2510_v48, %v1543_v21 }
 0x1a6   : > { %v1535_v46 = vadd.f32 %v2500_v32, %v1499_v22  ;;  %v1429_v29 = vpop.f32.mrf.mxu3 }
 0x1a7   : > { %v1643_v0 = vsel %vm1575_vm11, %v1543_v21, %v1611_v59  ;;  %v1472_v2 = vadd.f32 %v1429_v29, %v1299_v12  ;;  %v1278_v52 = vpop.f32.mrf.mxu1 }
 0x1a8   : > { %1676 = vst.msk [vmem:[%s2521_s28 + $0xc0] sm:$0xff] %vm1651_vm10, %v1643_v0  ;;  %vm1567_vm12 = vcmp.ge.f32.partialorder %v1535_v46, 0.0  ;;  %v1603_v53 = vmul.f32 %v2510_v48, %v1535_v46  ;;  %v1279_v3 = vadd.f32 %v1278_v52, %v1175_v28 }
 0x1a9   : > { %v1508_v60 = vmul.f32 %v2493_v34, %v1472_v2  ;;  %v1412_v50 = vpop.f32.mrf.mxu2 }
 0x1aa   : > { %v1635_v58 = vsel %vm1567_vm12, %v1535_v46, %v1603_v53  ;;  %v1464_v4 = vadd.f32 %v1409_v51, %v1279_v3  ;;  %v1309_v3 = vadd.f32 %v2628_v45, %v2564_v26 }
 0x1ab   : > { %1668 = vst.msk [vmem:[%s2521_s28 + $0x80] sm:$0xff] %vm1651_vm10, %v1635_v58  ;;  %v1544_v5 = vadd.f32 %v2500_v32, %v1508_v60  ;;  %v1178_v61 = vpop.f32.mrf.mxu0 }
 0x1ac   : > { %v1500_v6 = vmul.f32 %v2493_v34, %v1464_v4 }
 0x1ad   : > { %vm1576_vm13 = vcmp.ge.f32.partialorder %v1544_v5, 0.0  ;;  %v1612_v47 = vmul.f32 %v2510_v48, %v1544_v5 }
 0x1ae   : > { %v1536_v10 = vadd.f32 %v2500_v32, %v1500_v6  ;;  %v1432_v25 = vpop.f32.mrf.mxu3 }
 0x1af   : > { %v1644_v14 = vsel %vm1576_vm13, %v1544_v5, %v1612_v47  ;;  %v1473_v35 = vadd.f32 %v1432_v25, %v1302_v1  ;;  %v1281_v15 = vpop.f32.mrf.mxu1 }
 0x1b0   : > { %1677 = vst.msk [vmem:[%s2521_s28 + $0xc8] sm:$0xff] %vm1651_vm10, %v1644_v14  ;;  %vm1568_vm14 = vcmp.ge.f32.partialorder %v1536_v10, 0.0  ;;  %v1604_v17 = vmul.f32 %v2510_v48, %v1536_v10  ;;  %v1282_v43 = vadd.f32 %v1281_v15, %v1178_v61 }
 0x1b1   : > { %v1509_v19 = vmul.f32 %v2493_v34, %v1473_v35  ;;  %v1414_v63 = vpop.f32.mrf.mxu2  ;;  %v1312_v35 = vadd.f32 %v2635_v42, %v2577_v41 }
 0x1b2   : > { %v1636_v37 = vsel %vm1568_vm14, %v1536_v10, %v1604_v17  ;;  %v1465_v13 = vadd.f32 %v1412_v50, %v1282_v43 }
 0x1b3   : > { %1669 = vst.msk [vmem:[%s2521_s28 + $0x88] sm:$0xff] %vm1651_vm10, %v1636_v37  ;;  %v1545_v16 = vadd.f32 %v2500_v32, %v1509_v19  ;;  %v1180_v20 = vpop.f32.mrf.mxu0 }
 0x1b4   : > { %v1501_v24 = vmul.f32 %v2493_v34, %v1465_v13 }
 0x1b5   : > { %vm1577_vm15 = vcmp.ge.f32.partialorder %v1545_v16, 0.0  ;;  %v1613_v27 = vmul.f32 %v2510_v48, %v1545_v16 }
 0x1b6   : > { %v1537_v33 = vadd.f32 %v2500_v32, %v1501_v24  ;;  %v1434_v23 = vpop.f32.mrf.mxu3 }
 0x1b7   : > { %v1645_v7 = vsel %vm1577_vm15, %v1545_v16, %v1613_v27  ;;  %v1474_v31 = vadd.f32 %v1434_v23, %v1304_v18  ;;  %v1283_v39 = vpop.f32.mrf.mxu1  ;;  %v1314_v23 = vadd.f32 %v2642_v30, %v2586_v9 }
 0x1b8   : > { %1678 = vst.msk [vmem:[%s2521_s28 + $0xd0] sm:$0xff] %vm1651_vm10, %v1645_v7  ;;  %vm1569_vm0 = vcmp.ge.f32.partialorder %v1537_v33, 0.0  ;;  %v1605_v40 = vmul.f32 %v2510_v48, %v1537_v33  ;;  %v1284_v11 = vadd.f32 %v1283_v39, %v1180_v20 }
 0x1b9   : > { %v1510_v62 = vmul.f32 %v2493_v34, %v1474_v31  ;;  %v1417_v49 = vpop.f32.mrf.mxu2 }
 0x1ba   : > { %v1637_v44 = vsel %vm1569_vm0, %v1537_v33, %v1605_v40  ;;  %v1466_v56 = vadd.f32 %v1414_v63, %v1284_v11 }
 0x1bb   : > { %1670 = vst.msk [vmem:[%s2521_s28 + $0x90] sm:$0xff] %vm1651_vm10, %v1637_v44  ;;  %v1546_v38 = vadd.f32 %v2500_v32, %v1510_v62  ;;  %v1183_v36 = vpop.f32.mrf.mxu0 }
 0x1bc   : > { %v1502_v51 = vmul.f32 %v2493_v34, %v1466_v56 }
 0x1bd   : > { %vm1578_vm1 = vcmp.ge.f32.partialorder %v1546_v38, 0.0  ;;  %v1614_v57 = vmul.f32 %v2510_v48, %v1546_v38 }
 0x1be   : > { %v1538_v21 = vadd.f32 %v2500_v32, %v1502_v51  ;;  %v1437_v28 = vpop.f32.mrf.mxu3 }
 0x1bf   : > { %v1646_v22 = vsel %vm1578_vm1, %v1546_v38, %v1614_v57  ;;  %v1475_v12 = vadd.f32 %v1437_v28, %v1307_v54  ;;  %v1286_v59 = vpop.f32.mrf.mxu1 }
 0x1c0   : > { %1679 = vst.msk [vmem:[%s2521_s28 + $0xd8] sm:$0xff] %vm1651_vm10, %v1646_v22  ;;  %vm1570_vm2 = vcmp.ge.f32.partialorder %v1538_v21, 0.0  ;;  %v1606_v46 = vmul.f32 %v2510_v48, %v1538_v21  ;;  %v1287_v29 = vadd.f32 %v1286_v59, %v1183_v36 }
 0x1c1   : > { %v1511_v0 = vmul.f32 %v2493_v34, %v1475_v12  ;;  %v1419_v50 = vpop.f32.mrf.mxu2 }
 0x1c2   : > { %v1638_v2 = vsel %vm1570_vm2, %v1538_v21, %v1606_v46  ;;  %v1467_v8 = vadd.f32 %v1417_v49, %v1287_v29 }
 0x1c3   : > { %1671 = vst.msk [vmem:[%s2521_s28 + $0x98] sm:$0xff] %vm1651_vm10, %v1638_v2  ;;  %v1547_v55 = vadd.f32 %v2500_v32, %v1511_v0  ;;  %v1185_v52 = vpop.f32.mrf.mxu0 }
 0x1c4   : > { %v1503_v53 = vmul.f32 %v2493_v34, %v1467_v8 }
 0x1c5   : > { %vm1579_vm3 = vcmp.ge.f32.partialorder %v1547_v55, 0.0  ;;  %v1615_v60 = vmul.f32 %v2510_v48, %v1547_v55 }
 0x1c6   : > { %v1539_v58 = vadd.f32 %v2500_v32, %v1503_v53  ;;  %v1439_v4 = vpop.f32.mrf.mxu3 }
 0x1c7   : > { %v1647_v5 = vsel %vm1579_vm3, %v1547_v55, %v1615_v60  ;;  %v1476_v61 = vadd.f32 %v1439_v4, %v1309_v3  ;;  %v1288_v6 = vpop.f32.mrf.mxu1 }
 0x1c8   : > { %1680 = vst.msk [vmem:[%s2521_s28 + $0xe0] sm:$0xff] %vm1651_vm10, %v1647_v5  ;;  %vm1571_vm4 = vcmp.ge.f32.partialorder %v1539_v58, 0.0  ;;  %v1607_v1 = vmul.f32 %v2510_v48, %v1539_v58  ;;  %v1289_v47 = vadd.f32 %v1288_v6, %v1185_v52 }
 0x1c9   : > { %v1512_v10 = vmul.f32 %v2493_v34, %v1476_v61  ;;  %v1422_v37 = vpop.f32.mrf.mxu2 }
 0x1ca   : > { %v1639_v26 = vsel %vm1571_vm4, %v1539_v58, %v1607_v1  ;;  %v1468_v45 = vadd.f32 %v1419_v50, %v1289_v47 }
 0x1cb   : > { %1672 = vst.msk [vmem:[%s2521_s28 + $0xa0] sm:$0xff] %vm1651_vm10, %v1639_v26  ;;  %v1548_v25 = vadd.f32 %v2500_v32, %v1512_v10  ;;  %v1188_v17 = vpop.f32.mrf.mxu0 }
 0x1cc   : > { %v1504_v14 = vmul.f32 %v2493_v34, %v1468_v45 }
 0x1cd   : > { %vm1580_vm5 = vcmp.ge.f32.partialorder %v1548_v25, 0.0  ;;  %v1616_v15 = vmul.f32 %v2510_v48, %v1548_v25 }
 0x1ce   : > { %v1540_v43 = vadd.f32 %v2500_v32, %v1504_v14  ;;  %v1442_v19 = vpop.f32.mrf.mxu3 }
 0x1cf   : > { %v1648_v63 = vsel %vm1580_vm5, %v1548_v25, %v1616_v15  ;;  %v1477_v13 = vadd.f32 %v1442_v19, %v1312_v35  ;;  %v1291_v16 = vpop.f32.mrf.mxu1 }
 0x1d0   : > { %1681 = vst.msk [vmem:[%s2521_s28 + $0xe8] sm:$0xff] %vm1651_vm10, %v1648_v63  ;;  %vm1572_vm6 = vcmp.ge.f32.partialorder %v1540_v43, 0.0  ;;  %v1608_v20 = vmul.f32 %v2510_v48, %v1540_v43  ;;  %v1292_v24 = vadd.f32 %v1291_v16, %v1188_v17 }
 0x1d1   : > { %v1513_v41 = vmul.f32 %v2493_v34, %v1477_v13  ;;  %v1424_v9 = vpop.f32.mrf.mxu2 }
 0x1d2   : > { %v1640_v42 = vsel %vm1572_vm6, %v1540_v43, %v1608_v20  ;;  %v1469_v18 = vadd.f32 %v1422_v37, %v1292_v24 }
 0x1d3   : > { %1673 = vst.msk [vmem:[%s2521_s28 + $0xa8] sm:$0xff] %vm1651_vm10, %v1640_v42  ;;  %v1549_v27 = vadd.f32 %v2500_v32, %v1513_v41  ;;  %v1190_v11 = vpop.f32.mrf.mxu0 }
 0x1d4   : > { %v1505_v33 = vmul.f32 %v2493_v34, %v1469_v18 }
 0x1d5   : > { %vm1581_vm7 = vcmp.ge.f32.partialorder %v1549_v27, 0.0  ;;  %v1617_v7 = vmul.f32 %v2510_v48, %v1549_v27 }
 0x1d6   : > { %v1541_v31 = vadd.f32 %v2500_v32, %v1505_v33  ;;  %v1444_v39 = vpop.f32.mrf.mxu3 }
 0x1d7   : > { %v1649_v40 = vsel %vm1581_vm7, %v1549_v27, %v1617_v7  ;;  %v1478_v62 = vadd.f32 %v1444_v39, %v1314_v23  ;;  %v1293_v44 = vpop.f32.mrf.mxu1 }
 0x1d8   : > { %1682 = vst.msk [vmem:[%s2521_s28 + $0xf0] sm:$0xff] %vm1651_vm10, %v1649_v40  ;;  %vm1573_vm8 = vcmp.ge.f32.partialorder %v1541_v31, 0.0  ;;  %v1609_v56 = vmul.f32 %v2510_v48, %v1541_v31  ;;  %v1294_v38 = vadd.f32 %v1293_v44, %v1190_v11 }
 0x1d9   : > { %v1514_v30 = vmul.f32 %v2493_v34, %v1478_v62 }
 0x1da   : > { %v1641_v49 = vsel %vm1573_vm8, %v1541_v31, %v1609_v56  ;;  %v1470_v36 = vadd.f32 %v1424_v9, %v1294_v38 }
 0x1db   : > { %1674 = vst.msk [vmem:[%s2521_s28 + $0xb0] sm:$0xff] %vm1651_vm10, %v1641_v49  ;;  %v1550_v51 = vadd.f32 %v2500_v32, %v1514_v30 }
 0x1dc   : > { %v1506_v54 = vmul.f32 %v2493_v34, %v1470_v36 }
 0x1dd   : > { %vm1582_vm9 = vcmp.ge.f32.partialorder %v1550_v51, 0.0  ;;  %v1618_v57 = vmul.f32 %v2510_v48, %v1550_v51 }
 0x1de   : > { %v1542_v21 = vadd.f32 %v2500_v32, %v1506_v54 }
 0x1df   : > { %v1650_v28 = vsel %vm1582_vm9, %v1550_v51, %v1618_v57 }
 0x1e0   : > { %1683 = vst.msk [vmem:[%s2521_s28 + $0xf8] sm:$0xff] %vm1651_vm10, %v1650_v28  ;;  %vm1574_vm11 = vcmp.ge.f32.partialorder %v1542_v21, 0.0  ;;  %v1610_v22 = vmul.f32 %v2510_v48, %v1542_v21 }
 0x1e2   : > { %v1642_v12 = vsel %vm1574_vm11, %v1542_v21, %v1610_v22 }
 0x1e3   : > { %1675 = vst.msk [vmem:[%s2521_s28 + $0xb8] sm:$0xff] %vm1651_vm10, %v1642_v12 }
 0x1e4 PF: > { %s15_s20 = sadd.s32 1, %s2002_s20   ;;  %s2765_s18 = smov %s1998_s19 }
 0x1e5   : > { %p12_p5 = scmp.ge.s32.totalorder %s15_s20, 4   ;;  %s2766_s19 = smov %s2768_s21 }
 0x1e7   :  { %14 = sbr.rel (!%p12_p5) target bundleno = 2 (0x2), region = 73 }

</bundles_post_ra>
